<compile_context>
chip_gen: v6e
topology: v6e:2x2x1
jax: 0.10.0
libtpu: 0.0.40
codegen_flags: <defaults>
</compile_context>

<pallas_src>
import functools
import numpy as np
import jax
import jax.numpy as jnp
from jax import lax
from jax.experimental import pallas as pl
from jax.experimental.pallas import tpu as pltpu


def _round_up(x, m):
    return ((x + m - 1) // m) * m


def _make_fused_kernel(*, kh_sz, kw_sz, stride, toh, h_need, wp_pad, wout_p,
                       dictp, coutp):
    kwd = kw_sz * dictp            # lane width of the W-windowed S
    big_k = kh_sz * kwd            # contraction size of the single stage-2 matmul

    def kernel(x_ref, d_ref, p_ref, o_ref):
        # x_ref: (1, Hp*Wp, KW*Cin)       bf16  W-windowed, flattened input image
        # d_ref: (KW*Cin, KW*dictp)       bf16  block-diagonal 1x1-conv matrix
        # p_ref: (KH*KW*dictp, coutp)     bf16  spatial filter, im2col row order
        # o_ref: (1, TOH, Wout_p, coutp)  out dtype (bf16 by default)
        rt = pl.program_id(1)
        start = pl.multiple_of(rt * (toh * stride) * wp_pad, wp_pad)

        # ---- stage 1: windowed pointwise (1x1) conv; S stays in VMEM only.
        x2 = x_ref[0, pl.ds(start, h_need * wp_pad), :]     # (h_need*Wp, KW*Cin)
        s_win = jnp.dot(x2, d_ref[...], preferred_element_type=jnp.float32)
        s_win = s_win.astype(jnp.bfloat16)                   # (h_need*Wp, KW*dictp)
        # s_win[h*Wp + w, kw*dictp + d] == S_padded[row0 + h, w + kw, d]

        # ---- stage 2: im2col (aligned slices + lane concat) + one big-K matmul.
        if stride == 1:
            taps = [s_win[kh * wp_pad:(kh + toh) * wp_pad]   # 16-row aligned slice
                    for kh in range(kh_sz)]
            im2col = jnp.concatenate(taps, axis=-1)          # (TOH*Wp, big_k)
            outf = jnp.dot(im2col, p_ref[...],
                           preferred_element_type=jnp.float32)
            out3 = outf.reshape(toh, wp_pad, coutp)[:, :wout_p, :]
        else:
            # TODO(synk): stride > 1 fallback (strided slices may relayout).
            s3 = s_win.reshape(h_need, wp_pad, kwd)
            taps = [lax.slice(s3, (kh, 0, 0),
                              (kh + (toh - 1) * stride + 1,
                               (wout_p - 1) * stride + 1, kwd),
                              (stride, stride, 1))
                    for kh in range(kh_sz)]
            im2col = jnp.concatenate(taps, axis=-1).reshape(toh * wout_p, big_k)
            outf = jnp.dot(im2col, p_ref[...],
                           preferred_element_type=jnp.float32)
            out3 = outf.reshape(toh, wout_p, coutp)

        o_ref[0] = out3.astype(o_ref.dtype)

    return kernel


def lcnn_conv2d_forward(x_nchw, D, P, stride=1, padding=0, *,
                        out_dtype=jnp.bfloat16, row_tile=None):
    """x: (N, Cin, H, W); D: (dict, Cin, 1, 1); P: (Cout, dict, KH, KW) -> NCHW f32."""
    n, cin, h, w = x_nchw.shape
    dict_sz = D.shape[0]
    cout, _, kh_sz, kw_sz = P.shape

    hout = (h + 2 * padding - kh_sz) // stride + 1
    wout = (w + 2 * padding - kw_sz) // stride + 1

    # Lane padding: 128-aligned, 256-aligned for large dims (v6e/v7x 256^2 MXU).
    dictp = _round_up(dict_sz, 256 if dict_sz > 128 else 128)
    coutp = _round_up(cout, 256 if cout > 128 else 128)
    wout_p = _round_up(wout, 8)

    # Padded image width; multiple of 16 keeps every in-kernel bf16 slice /
    # reshape layout-free (no relayout copies).
    wp_req = (wout_p - 1) * stride + kw_sz
    wp_pad = _round_up(max(w + 2 * padding, wp_req), 16)

    # Row tile: target stage-2 M = toh * wp_pad >= 512.
    if row_tile is None:
        row_tile = max(8, -(-512 // wp_pad))
    toh = min(row_tile, hout)
    if n == 1 and -(-hout // toh) == 1 and hout > 8:
        toh = _round_up(-(-hout // 2), 8)        # give both v7x cores a row tile
    n_rt = -(-hout // toh)
    hout_p = n_rt * toh
    h_need = (toh - 1) * stride + kh_sz

    hp_req = (hout_p - 1) * stride + kh_sz
    hp_pad = max(h + 2 * padding, hp_req)

    # ---- host-side (XLA) layout prep: cheap relative to the kernel.
    # NCHW -> NHWC bf16, zero pad spatially (padding x is equivalent to padding
    # S for a bias-free 1x1 conv).
    x_nhwc = jnp.transpose(x_nchw, (0, 2, 3, 1)).astype(jnp.bfloat16)
    x_p = jnp.pad(x_nhwc, ((0, 0),
                           (padding, hp_pad - h - padding),
                           (padding, wp_pad - w - padding),
                           (0, 0)))
    # W-window: x_win[n,h,w, kw*Cin+c] = x_p[n,h,w+kw,c]; folds the kw taps into
    # the (tiny) lane dim so the kernel never shifts along W.
    x_win = jnp.concatenate(
        [jnp.pad(x_p[:, :, kw:, :], ((0, 0), (0, 0), (0, kw), (0, 0)))
         for kw in range(kw_sz)], axis=-1)
    x_flat = x_win.reshape(n, hp_pad * wp_pad, kw_sz * cin)

    # D: (dict, Cin, 1, 1) -> block-diagonal (KW*Cin, KW*dictp) bf16.
    d_mat = jnp.transpose(D[:, :, 0, 0], (1, 0))
    d_mat = jnp.pad(d_mat, ((0, 0), (0, dictp - dict_sz)))
    d_blk = jnp.kron(jnp.eye(kw_sz, dtype=d_mat.dtype), d_mat).astype(jnp.bfloat16)

    # P: (Cout, dict, KH, KW) -> (KH*KW*dictp, coutp) bf16, im2col row ordering.
    p_t = jnp.transpose(P, (2, 3, 1, 0))
    p_t = jnp.pad(p_t, ((0, 0), (0, 0), (0, dictp - dict_sz), (0, coutp - cout)))
    p_big = p_t.reshape(kh_sz * kw_sz * dictp, coutp).astype(jnp.bfloat16)

    kernel = _make_fused_kernel(kh_sz=kh_sz, kw_sz=kw_sz, stride=stride,
                                toh=toh, h_need=h_need, wp_pad=wp_pad,
                                wout_p=wout_p, dictp=dictp, coutp=coutp)

    out_p = pl.pallas_call(
        kernel,
        out_shape=jax.ShapeDtypeStruct((n, hout_p, wout_p, coutp), out_dtype),
        grid=(n, n_rt),
        in_specs=[
            # Full flattened image per batch element (constant across rt, so it
            # is DMA'd once per batch element).  TODO(synk): row-block + halo
            # via manual DMA for images too large for v7x's 64 MiB VMEM.
            pl.BlockSpec((1, hp_pad * wp_pad, kw_sz * cin),
                         lambda b, rt: (b, 0, 0)),
            pl.BlockSpec((kw_sz * cin, kw_sz * dictp), lambda b, rt: (0, 0)),
            pl.BlockSpec((kh_sz * kw_sz * dictp, coutp), lambda b, rt: (0, 0)),
        ],
        out_specs=pl.BlockSpec((1, toh, wout_p, coutp),
                               lambda b, rt: (b, rt, 0, 0)),
        compiler_params=pltpu.CompilerParams(
            dimension_semantics=("parallel", "parallel")),
    )(x_flat, d_blk, p_big)

    out = out_p[:, :hout, :wout, :cout]
    return jnp.transpose(out, (0, 3, 1, 2)).astype(jnp.float32)   # NHWC -> NCHW


if __name__ == "__main__":
    N, Cin, H, W = 2, 4, 16, 16
    Cout, KH, KW = 8, 3, 3
    DICT = 100
    STRIDE, PAD = 1, 1

    key = jax.random.PRNGKey(0)
    k1, k2, k3 = jax.random.split(key, 3)

    x = jax.random.normal(k1, (N, Cin, H, W), jnp.float32)
    # Deterministic kaiming-uniform-style init (shapes from __init__).
    bd = float(np.sqrt(6.0 / (Cin * 1 * 1)))
    D = jax.random.uniform(k2, (DICT, Cin, 1, 1), jnp.float32, -bd, bd)
    bp = float(np.sqrt(6.0 / (DICT * KH * KW)))
    P = jax.random.uniform(k3, (Cout, DICT, KH, KW), jnp.float32, -bp, bp)

    fwd = jax.jit(functools.partial(lcnn_conv2d_forward, stride=STRIDE, padding=PAD))
    out = jax.block_until_ready(fwd(x, D, P))

    # Reference: XLA convolutions on bf16-rounded operands (same quantization
    # points as the kernel: bf16 MXU inputs, bf16 S, bf16 output), f32 accum.
    xq = x.astype(jnp.bfloat16).astype(jnp.float32)
    Dq = D.astype(jnp.bfloat16).astype(jnp.float32)
    Pq = P.astype(jnp.bfloat16).astype(jnp.float32)
    s_ref = jax.lax.conv_general_dilated(
        xq, Dq, window_strides=(1, 1), padding='VALID',
        dimension_numbers=('NCHW', 'OIHW', 'NCHW'),
        precision=jax.lax.Precision.HIGHEST)
    s_ref = s_ref.astype(jnp.bfloat16).astype(jnp.float32)
    out_ref = jax.lax.conv_general_dilated(
        s_ref, Pq, window_strides=(STRIDE, STRIDE),
        padding=[(PAD, PAD), (PAD, PAD)],
        dimension_numbers=('NCHW', 'OIHW', 'NCHW'),
        precision=jax.lax.Precision.HIGHEST)
    out_ref = out_ref.astype(jnp.bfloat16).astype(jnp.float32)
    out_ref = jax.block_until_ready(out_ref)

    assert out.shape == out_ref.shape, (out.shape, out_ref.shape)
    np.testing.assert_allclose(np.asarray(out), np.asarray(out_ref),
                               rtol=2e-2, atol=2e-2)
    print("KERNEL_OK")
</pallas_src>

<mosaic_0001>
module attributes {stable_mosaic.version = 11 : i64} {
  func.func @kernel(%arg0: i32, %arg1: i32, %arg2: memref<1x576x12xbf16, #tpu.memory_space<vmem>>, %arg3: memref<12x384xbf16, #tpu.memory_space<vmem>>, %arg4: memref<1152x128xbf16, #tpu.memory_space<vmem>>, %arg5: memref<1x16x16x128xbf16, #tpu.memory_space<vmem>>) attributes {dimension_semantics = [#tpu.dimension_semantics<parallel>, #tpu.dimension_semantics<parallel>], iteration_bounds = array<i64: 2, 1>, scalar_prefetch = 0 : i64, scratch_operands = 0 : i64, tpu.core_type = #tpu.core_type<tc>, window_params = [{transform_indices = @transform_0, window_bounds = array<i64: 1, 576, 12>}, {pipeline_mode = #tpu.pipeline_mode<synchronous>, transform_indices = @transform_1, window_bounds = array<i64: 12, 384>}, {pipeline_mode = #tpu.pipeline_mode<synchronous>, transform_indices = @transform_2, window_bounds = array<i64: 1152, 128>}, {transform_indices = @transform_3, window_bounds = array<i64: 1, 16, 16, 128>}]} {
    %c16_i32 = arith.constant 16 : i32
    %0 = arith.muli %arg1, %c16_i32 : i32
    %c32_i32 = arith.constant 32 : i32
    %1 = arith.muli %0, %c32_i32 : i32
    %2 = tpu.assume_multiple %1, 32 : i32
    %c0 = arith.constant 0 : index
    %3 = arith.index_cast %2 : i32 to index
    %c0_0 = arith.constant 0 : index
    %4 = vector.load %arg2[%c0, %3, %c0_0] : memref<1x576x12xbf16, #tpu.memory_space<vmem>>, vector<1x576x12xbf16>
    %5 = vector.shape_cast %4 : vector<1x576x12xbf16> to vector<576x12xbf16>
    %c0_1 = arith.constant 0 : index
    %c0_2 = arith.constant 0 : index
    %6 = vector.load %arg3[%c0_1, %c0_2] : memref<12x384xbf16, #tpu.memory_space<vmem>>, vector<12x384xbf16>
    %cst = arith.constant dense<0.000000e+00> : vector<576x384xf32>
    %7 = tpu.matmul %5, %6, %cst {dimension_numbers = #tpu.dot_dimension_numbers<[1], [0], [0], [1], [0, 0, 1, 1], [], []>} : vector<576x12xbf16>, vector<12x384xbf16>, vector<576x384xf32> -> vector<576x384xf32>
    %8 = arith.truncf %7 : vector<576x384xf32> to vector<576x384xbf16>
    %9 = vector.extract_strided_slice %8 {offsets = [0, 0], sizes = [512, 384], strides = [1, 1]} : vector<576x384xbf16> to vector<512x384xbf16>
    %10 = vector.extract_strided_slice %8 {offsets = [32, 0], sizes = [512, 384], strides = [1, 1]} : vector<576x384xbf16> to vector<512x384xbf16>
    %11 = vector.extract_strided_slice %8 {offsets = [64, 0], sizes = [512, 384], strides = [1, 1]} : vector<576x384xbf16> to vector<512x384xbf16>
    %12 = tpu.concatenate %9, %10, %11 in 1 : vector<512x384xbf16>, vector<512x384xbf16>, vector<512x384xbf16> -> vector<512x1152xbf16>
    %c0_3 = arith.constant 0 : index
    %c0_4 = arith.constant 0 : index
    %13 = vector.load %arg4[%c0_3, %c0_4] : memref<1152x128xbf16, #tpu.memory_space<vmem>>, vector<1152x128xbf16>
    %cst_5 = arith.constant dense<0.000000e+00> : vector<512x128xf32>
    %14 = tpu.matmul %12, %13, %cst_5 {dimension_numbers = #tpu.dot_dimension_numbers<[1], [0], [0], [1], [0, 0, 1, 1], [], []>} : vector<512x1152xbf16>, vector<1152x128xbf16>, vector<512x128xf32> -> vector<512x128xf32>
    %15 = vector.shape_cast %14 : vector<512x128xf32> to vector<16x32x128xf32>
    %16 = vector.extract_strided_slice %15 {offsets = [0, 0, 0], sizes = [16, 16, 128], strides = [1, 1, 1]} : vector<16x32x128xf32> to vector<16x16x128xf32>
    %17 = arith.truncf %16 : vector<16x16x128xf32> to vector<16x16x128xbf16>
    %c0_6 = arith.constant 0 : index
    %c0_7 = arith.constant 0 : index
    %c0_8 = arith.constant 0 : index
    %c0_9 = arith.constant 0 : index
    %18 = vector.load %arg5[%c0_6, %c0_7, %c0_8, %c0_9] : memref<1x16x16x128xbf16, #tpu.memory_space<vmem>>, vector<1x16x16x128xbf16>
    %19 = vector.shape_cast %18 : vector<1x16x16x128xbf16> to vector<16x16x128xbf16>
    %20 = vector.shape_cast %17 : vector<16x16x128xbf16> to vector<1x16x16x128xbf16>
    tpu.vector_store %arg5[%c0_6, %c0_7, %c0_8, %c0_9], %20 {strides = array<i32>} : memref<1x16x16x128xbf16, #tpu.memory_space<vmem>>, vector<1x16x16x128xbf16>,
    return
  }
  func.func @transform_0(%arg0: i32, %arg1: i32) -> (i32, i32, i32) {
    %c0_i32 = arith.constant 0 : i32
    %c0_i32_0 = arith.constant 0 : i32
    %c0_i32_1 = arith.constant 0 : i32
    return %arg0, %c0_i32, %c0_i32_0 : i32, i32, i32
  }
  func.func @transform_1(%arg0: i32, %arg1: i32) -> (i32, i32) {
    %c0_i32 = arith.constant 0 : i32
    %c0_i32_0 = arith.constant 0 : i32
    %c0_i32_1 = arith.constant 0 : i32
    return %c0_i32, %c0_i32_0 : i32, i32
  }
  func.func @transform_2(%arg0: i32, %arg1: i32) -> (i32, i32) {
    %c0_i32 = arith.constant 0 : i32
    %c0_i32_0 = arith.constant 0 : i32
    %c0_i32_1 = arith.constant 0 : i32
    return %c0_i32, %c0_i32_0 : i32, i32
  }
  func.func @transform_3(%arg0: i32, %arg1: i32) -> (i32, i32, i32, i32) {
    %c0_i32 = arith.constant 0 : i32
    %c0_i32_0 = arith.constant 0 : i32
    %c0_i32_1 = arith.constant 0 : i32
    return %arg0, %arg1, %c0_i32, %c0_i32_0 : i32, i32, i32, i32
  }
}

</mosaic_0001>

<bundles_post_ra>
// kernel: lcnn_conv2d_forward.1
= control target key start
LH: loop header
LB: loop body
LE: loop exit
PB: predicated region body
PF: predicated region fallthrough
CT: control target
= control target key end

     0   :  { %s4293_s12 = smov 0   ;;  %s4295_s13 = smov 0   ;;  %s5912_s0 = inlined_call_operand.vmem [shape: bf16[2,576,12], index: 0, kind: input, shape index: {}]   ;;  %s5913_s1 = inlined_call_operand.vmem [shape: bf16[12,384], index: 1, kind: input, shape index: {}]   ;;  %s5914_s2 = inlined_call_operand.vmem [shape: bf16[1152,128], index: 2, kind: input, shape index: {}]   ;;  %s5915_s3 = inlined_call_operand.vmem [shape: bf16[2,16,16,128], index: 3, kind: output, shape index: {}]  }
   0x1   :  { %s4297_s14 = smov 0  }
   0x2 LB: > { %s25_s15 = sadd.s32 1, %s4266_s13  ;;  %p3526_p0 = scmp.ge.s32.totalorder %s4270_s14, 1  ;;  %s4270_s14 = sphi %s4297_s14, %s13_s14   ;;  %s4266_s13 = sphi %s4295_s13, %s6241_s13   ;;  %s4262_s12 = sphi %s4293_s12, %s6240_s12  }
   0x3   : > { %p27_p1 = scmp.ge.s32.totalorder %s25_s15, 2  ;;  %p151_p2 = scmp.lt.s32.totalorder %s4270_s14, 3 }
   0x5   : > { %s6243_s15 = smov (%p27_p1, %s25_s15), 0  ;;  %p152_p3 = pnand %p3526_p0, %p151_p2 }
   0x7   : > { %155 = sbr.rel (%p152_p3) target bundleno = 1057 (0x421), region = 32 }
   0xc   : > { %v4136_v0 = vld [vmem:[%s5913_s1 + $0x4] ss:$12 sps:$4 sm:$0x3f]   ;;  %vm580_vm0 = vcmask 1045504   ;;  %p180_p4 = scmp.lt.s32.totalorder %s4262_s12, 1  ;;  %v5933_v2 = vmov 0  }
   0xd   : > { %v4138_v1 = vld [vmem:[%s5913_s1] ss:$12 sps:$4 sm:$0x3f]   ;;  %3569 = vmatprep.subr.msk.bf16.mxu0 %vm580_vm0, %v4136_v0  ;;  %622 = vmatprep.mubr.bf16.mxu0 %v5933_v2  ;;  %v4147_v4 = vld [vmem:[%s5913_s1 + $0x8] ss:$12 sps:$4 sm:$0x3f]  }
   0xe   : > { %v582_v3 = vsel %vm580_vm0, %v4138_v1, 0  ;;  %s6245_s12 = smov (!%p180_p4, %s4262_s12), 1  ;;  %4107 = vmatprep.subr.msk.bf16.mxu1 %vm580_vm0, %v4136_v0  ;;  %972 = vmatprep.mubr.bf16.mxu1 %v5933_v2  ;;  %vm471_vm1 = vcmask 97280   ;;  %v4148_v5 = vld [vmem:[%s5914_s2 + $0xb8] sm:$0xff]   ;;  %v4154_v7 = vld [vmem:[%s5914_s2 + $0xb0] sm:$0xff]   ;;  %v588_v10 = vsel %vm580_vm0, %v4147_v4, 0 }
   0xf   : > { %605 = vmatpush1.bf16.msra.mxu0 %v582_v3  ;;  %4108 = vmatpush1.bf16.msra.mxu1 %v582_v3  ;;  %s4110_s22 = smul.u32 288, %s6245_s12  ;;  %v4150_v11 = vld [vmem:[%s5914_s2 + $0x38] sm:$0xff]   ;;  %v4159_v13 = vld [vmem:[%s5914_s2 + $0xa8] sm:$0xff]   ;;  %v4152_v14 = vld [vmem:[%s5914_s2 + $0x30] sm:$0xff]   ;;  %s3748_s7 = sshll.u32 %s6245_s12, 7 }
  0x10   : > { %4109 = vmatprep.subr.msk.bf16.mxu1 %vm580_vm0, %v4147_v4  ;;  %2245 = vmatprep.subr.bf16.mxu0 %v5933_v2  ;;  %v4155_v16 = vld [vmem:[%s5914_s2 + $0x28] sm:$0xff]   ;;  %v4166_v17 = vld [vmem:[%s5914_s2 + $0xa0] sm:$0xff]   ;;  %v4160_v20 = vld [vmem:[%s5914_s2 + $0x18] sm:$0xff]   ;;  %s5831_s10 = scalar_lea.vmem %s5915_s3, %s3748_s7 }
  0x11   : > { %s4333_s25 = scalar_lea.vmem %s5912_s0, %s4110_s22  ;;  %v4157_v19 = vld [vmem:[%s5914_s2 + $0x20] sm:$0xff]   ;;  %v4173_v21 = vld [vmem:[%s5914_s2 + $0x98] sm:$0xff]   ;;  %v4163_v24 = vld [vmem:[%s5914_s2 + $0x10] sm:$0xff]  }
  0x12   : > { %v4139_v6 = vld [vmem:[%s4333_s25] sm:$0xff]   ;;  %v4140_v8 = vld [vmem:[%s4333_s25 + $0x8] sm:$0xff]   ;;  %v4347_v9 = vld [vmem:[%s4333_s25 + $0x118] sm:$0xff]  }
  0x13   : > { %3570 = vmatmul.mubr.msk.bf16.vlgmr.msra.gmra.mxu0 %vm471_vm1, %v4139_v6  ;;  %3605 = vmatmul.mubr.msk.bf16.vlgmr.msra.gmra.mxu1 %vm471_vm1, %v4347_v9  ;;  %v4141_v12 = vld [vmem:[%s4333_s25 + $0x10] sm:$0xff]   ;;  %v4142_v15 = vld [vmem:[%s4333_s25 + $0x18] sm:$0xff]   ;;  %v4143_v18 = vld [vmem:[%s4333_s25 + $0x20] sm:$0xff]  }
  0x14   : > { %632 = vmatprep.mubr.bf16.mxu0 %v5933_v2  ;;  %2246 = vmatpush1.bf16.msra.mxu0 %v4148_v5  ;;  %v4144_v22 = vld [vmem:[%s4333_s25 + $0x28] sm:$0xff]   ;;  %v4146_v23 = vld [vmem:[%s4333_s25 + $0x30] sm:$0xff]   ;;  %v4149_v27 = vld [vmem:[%s4333_s25 + $0x38] sm:$0xff]  }
  0x15   : > { %2247 = vmatprep.subr.bf16.mxu0 %v5933_v2  ;;  %3954 = vmatpush3.bf16.msra.mxu1 %v588_v10  ;;  %v4180_v25 = vld [vmem:[%s5914_s2 + $0x90] sm:$0xff]   ;;  %v4167_v26 = vld [vmem:[%s5914_s2 + $0x8] sm:$0xff]   ;;  %v4151_v28 = vld [vmem:[%s4333_s25 + $0x40] sm:$0xff]  }
  0x16   : > { %3955 = vmatprep.mubr.msk.bf16.mxu1 %vm471_vm1, %v4139_v6  ;;  %1988 = vmatprep.subr.bf16.mxu1 %v5933_v2  ;;  %v4170_v29 = vld [vmem:[%s5914_s2] sm:$0xff]   ;;  %v4187_v30 = vld [vmem:[%s5914_s2 + $0x88] sm:$0xff]   ;;  %v4174_v31 = vld [vmem:[%s5914_s2 + $0x78] sm:$0xff]  }
  0x17   : > { %v4153_v32 = vld [vmem:[%s4333_s25 + $0x48] sm:$0xff]   ;;  %v4156_v33 = vld [vmem:[%s4333_s25 + $0x50] sm:$0xff]   ;;  %v4194_v35 = vld [vmem:[%s5914_s2 + $0x80] sm:$0xff]  }
  0x18   : > { %2248 = vmatpush1.bf16.msra.mxu0 %v4154_v7  ;;  %v4178_v34 = vld [vmem:[%s5914_s2 + $0x70] sm:$0xff]   ;;  %v4158_v36 = vld [vmem:[%s4333_s25 + $0x58] sm:$0xff]   ;;  %v4183_v37 = vld [vmem:[%s5914_s2 + $0x68] sm:$0xff]  }
  0x19   : > { %2249 = vmatprep.subr.bf16.mxu0 %v5933_v2  ;;  %v4161_v38 = vld [vmem:[%s4333_s25 + $0x60] sm:$0xff]   ;;  %v4162_v40 = vld [vmem:[%s4333_s25 + $0x68] sm:$0xff]   ;;  %v4164_v41 = vld [vmem:[%s4333_s25 + $0x70] sm:$0xff]  }
  0x1a   : > { %v4186_v39 = vld [vmem:[%s5914_s2 + $0x60] sm:$0xff]   ;;  %v4190_v42 = vld [vmem:[%s5914_s2 + $0x58] sm:$0xff]   ;;  %v4193_v43 = vld [vmem:[%s5914_s2 + $0x50] sm:$0xff]  }
  0x1b   : > { %3571 = vmatmul.mubr.msk.bf16.gmra.mxu0 %vm471_vm1, %v4140_v8  ;;  %3956 = vmatmul.mubr.msk.bf16.vlgmr.msra.gmra.mxu1 %vm471_vm1, %v4140_v8  ;;  %v4165_v44 = vld [vmem:[%s4333_s25 + $0x78] sm:$0xff]   ;;  %v4479_v45 = vld [vmem:[%s4333_s25 + $0x80] sm:$0xff]   ;;  %v4197_v46 = vld [vmem:[%s5914_s2 + $0x48] sm:$0xff]  }
  0x1c   : > { %642 = vmatprep.mubr.bf16.mxu0 %v5933_v2  ;;  %1989 = vmatpush1.bf16.msra.mxu1 %v4150_v11  ;;  %v4200_v47 = vld [vmem:[%s5914_s2 + $0xf8] sm:$0xff]   ;;  %v4199_v48 = vld [vmem:[%s5914_s2 + $0x40] sm:$0xff]   ;;  %v4169_v49 = vld [vmem:[%s4333_s25 + $0x88] sm:$0xff]  }
  0x1d   : > { %3959 = vmatprep.mubr.msk.bf16.mxu1 %vm471_vm1, %v4141_v12  ;;  %1990 = vmatprep.subr.bf16.mxu1 %v5933_v2  ;;  %v4500_v50 = vld [vmem:[%s4333_s25 + $0x90] sm:$0xff]   ;;  %v4508_v51 = vld [vmem:[%s4333_s25 + $0x98] sm:$0xff]   ;;  %v4512_v52 = vld [vmem:[%s4333_s25 + $0xa0] sm:$0xff]  }
  0x1e   : > { %2250 = vmatpush1.bf16.msra.mxu0 %v4159_v13  ;;  %v4202_v53 = vld [vmem:[%s5914_s2 + $0xf0] sm:$0xff]   ;;  %v4525_v54 = vld [vmem:[%s4333_s25 + $0xa8] sm:$0xff]   ;;  %v4537_v56 = vld [vmem:[%s4333_s25 + $0xb8] sm:$0xff]  }
  0x1f   : > { %2251 = vmatprep.subr.bf16.mxu0 %v5933_v2  ;;  %v4528_v55 = vld [vmem:[%s4333_s25 + $0xb0] sm:$0xff]   ;;  %v4540_v57 = vld [vmem:[%s4333_s25 + $0xc0] sm:$0xff]   ;;  %v4204_v58 = vld [vmem:[%s5914_s2 + $0xe8] sm:$0xff]  }
  0x20   : > { %1991 = vmatpush1.bf16.msra.mxu1 %v4152_v14  ;;  %v4552_v59 = vld [vmem:[%s4333_s25 + $0xc8] sm:$0xff]   ;;  %v4556_v60 = vld [vmem:[%s4333_s25 + $0xd0] sm:$0xff]   ;;  %v4565_v61 = vld [vmem:[%s4333_s25 + $0xd8] sm:$0xff]  }
  0x21   : > { %1992 = vmatprep.subr.bf16.mxu1 %v5933_v2  ;;  %v4568_v62 = vld [vmem:[%s4333_s25 + $0xe0] sm:$0xff]   ;;  %v4580_v0 = vld [vmem:[%s4333_s25 + $0xe8] sm:$0xff]   ;;  %v4583_v1 = vld [vmem:[%s4333_s25 + $0xf0] sm:$0xff]  }
  0x22   : > { %2252 = vmatpush1.bf16.msra.mxu0 %v4166_v17  ;;  %v4206_v63 = vld [vmem:[%s5914_s2 + $0xe0] sm:$0xff]   ;;  %v4594_v3 = vld [vmem:[%s4333_s25 + $0xf8] sm:$0xff]   ;;  %v4609_v6 = vld [vmem:[%s4333_s25 + $0x108] sm:$0xff]  }
  0x23   : > { %3572 = vmatmul.mubr.msk.bf16.gmra.mxu0 %vm471_vm1, %v4141_v12  ;;  %3960 = vmatmul.mubr.msk.bf16.gmra.mxu1 %vm471_vm1, %v4142_v15  ;;  %v4597_v4 = vld [vmem:[%s4333_s25 + $0x100] sm:$0xff]   ;;  %v4208_v5 = vld [vmem:[%s5914_s2 + $0xd8] sm:$0xff]   ;;  %v4613_v7 = vld [vmem:[%s4333_s25 + $0x110] sm:$0xff]  }
  0x24   : > { %652 = vmatprep.mubr.bf16.mxu0 %v5933_v2  ;;  %3963 = vmatprep.mubr.msk.bf16.mxu1 %vm471_vm1, %v4143_v18  ;;  %v4210_v8 = vld [vmem:[%s5914_s2 + $0xd0] sm:$0xff]   ;;  %v4211_v10 = vld [vmem:[%s5914_s2 + $0xc8] sm:$0xff]   ;;  %v4212_v11 = vld [vmem:[%s5914_s2 + $0xc0] sm:$0xff]  }
  0x25   : > { %1993 = vmatpush1.bf16.msra.mxu1 %v4155_v16  ;;  %2253 = vmatprep.subr.bf16.mxu0 %v5933_v2  ;;  %v4201_v17 = vld [vmem:[%s5914_s2 + $0x138] sm:$0xff]  }
  0x26   : > { %1994 = vmatprep.subr.bf16.mxu1 %v5933_v2  ;;  %2254 = vmatpush1.bf16.msra.mxu0 %v4173_v21 }
  0x27   : > { %2255 = vmatprep.subr.bf16.mxu0 %v5933_v2 }
  0x29   : > { %1995 = vmatpush1.bf16.msra.mxu1 %v4157_v19 }
  0x2a   : > { %1996 = vmatprep.subr.bf16.mxu1 %v5933_v2  ;;  %2256 = vmatpush1.bf16.msra.mxu0 %v4180_v25 }
  0x2b   : > { %3573 = vmatmul.mubr.msk.bf16.gmra.mxu0 %vm471_vm1, %v4142_v15  ;;  %3964 = vmatmul.mubr.msk.bf16.gmra.mxu1 %vm471_vm1, %v4144_v22 }
  0x2c   : > { %662 = vmatprep.mubr.bf16.mxu0 %v5933_v2  ;;  %3967 = vmatprep.mubr.msk.bf16.mxu1 %vm471_vm1, %v4146_v23 }
  0x2d   : > { %1997 = vmatpush1.bf16.msra.mxu1 %v4160_v20  ;;  %2257 = vmatprep.subr.bf16.mxu0 %v5933_v2 }
  0x2e   : > { %1998 = vmatprep.subr.bf16.mxu1 %v5933_v2  ;;  %2258 = vmatpush1.bf16.msra.mxu0 %v4187_v30  ;;  %v4205_v30 = vld [vmem:[%s5914_s2 + $0x128] sm:$0xff]  }
  0x2f   : > { %2259 = vmatprep.subr.bf16.mxu0 %v5933_v2 }
  0x31   : > { %1999 = vmatpush1.bf16.msra.mxu1 %v4163_v24 }
  0x32   : > { %2000 = vmatprep.subr.bf16.mxu1 %v5933_v2  ;;  %2260 = vmatpush1.bf16.msra.mxu0 %v4194_v35 }
  0x33   : > { %3574 = vmatmul.mubr.msk.bf16.gmra.mxu0 %vm471_vm1, %v4143_v18  ;;  %3968 = vmatmul.mubr.msk.bf16.gmra.mxu1 %vm471_vm1, %v4149_v27 }
  0x34   : > { %672 = vmatprep.mubr.bf16.mxu0 %v5933_v2  ;;  %3971 = vmatprep.mubr.msk.bf16.mxu1 %vm471_vm1, %v4151_v28 }
  0x35   : > { %2001 = vmatpush1.bf16.msra.mxu1 %v4167_v26  ;;  %2261 = vmatprep.subr.bf16.mxu0 %v5933_v2 }
  0x36   : > { %2002 = vmatprep.subr.bf16.mxu1 %v5933_v2  ;;  %2262 = vmatpush2.bf16.msra.mxu0 %v4200_v47 }
  0x37   : > { %2263 = vmatprep.subr.bf16.mxu0 %v5933_v2 }
  0x39   : > { %2003 = vmatpush1.bf16.msra.mxu1 %v4170_v29 }
  0x3a   : > { %2004 = vmatprep.subr.bf16.mxu1 %v5933_v2  ;;  %2264 = vmatpush2.bf16.msra.mxu0 %v4202_v53 }
  0x3b   : > { %3575 = vmatmul.mubr.msk.bf16.gmra.mxu0 %vm471_vm1, %v4144_v22  ;;  %3972 = vmatmul.mubr.msk.bf16.gmra.mxu1 %vm471_vm1, %v4153_v32 }
  0x3c   : > { %682 = vmatprep.mubr.bf16.mxu0 %v5933_v2  ;;  %3975 = vmatprep.mubr.msk.bf16.mxu1 %vm471_vm1, %v4156_v33 }
  0x3d   : > { %2005 = vmatpush2.bf16.msra.mxu1 %v4174_v31  ;;  %2265 = vmatprep.subr.bf16.mxu0 %v5933_v2 }
  0x3e   : > { %2006 = vmatprep.subr.bf16.mxu1 %v5933_v2  ;;  %2266 = vmatpush2.bf16.msra.mxu0 %v4204_v58 }
  0x3f   : > { %2267 = vmatprep.subr.bf16.mxu0 %v5933_v2 }
  0x41   : > { %2007 = vmatpush2.bf16.msra.mxu1 %v4178_v34 }
  0x42   : > { %2008 = vmatprep.subr.bf16.mxu1 %v5933_v2  ;;  %2268 = vmatpush2.bf16.msra.mxu0 %v4206_v63 }
  0x43   : > { %3576 = vmatmul.mubr.msk.bf16.gmra.mxu0 %vm471_vm1, %v4146_v23  ;;  %3976 = vmatmul.mubr.msk.bf16.gmra.mxu1 %vm471_vm1, %v4158_v36  ;;  %v4203_v23 = vld [vmem:[%s5914_s2 + $0x130] sm:$0xff]  }
  0x44   : > { %692 = vmatprep.mubr.bf16.mxu0 %v5933_v2  ;;  %3979 = vmatprep.mubr.msk.bf16.mxu1 %vm471_vm1, %v4161_v38 }
  0x45   : > { %2009 = vmatpush2.bf16.msra.mxu1 %v4183_v37  ;;  %2269 = vmatprep.subr.bf16.mxu0 %v5933_v2 }
  0x46   : > { %2010 = vmatprep.subr.bf16.mxu1 %v5933_v2  ;;  %2270 = vmatpush2.bf16.msra.mxu0 %v4208_v5 }
  0x47   : > { %2271 = vmatprep.subr.bf16.mxu0 %v5933_v2 }
  0x49   : > { %2011 = vmatpush2.bf16.msra.mxu1 %v4186_v39 }
  0x4a   : > { %2012 = vmatprep.subr.bf16.mxu1 %v5933_v2  ;;  %2272 = vmatpush2.bf16.msra.mxu0 %v4210_v8 }
  0x4b   : > { %3577 = vmatmul.mubr.msk.bf16.gmra.mxu0 %vm471_vm1, %v4149_v27  ;;  %3980 = vmatmul.mubr.msk.bf16.gmra.mxu1 %vm471_vm1, %v4162_v40 }
  0x4c   : > { %702 = vmatprep.mubr.bf16.mxu0 %v5933_v2  ;;  %3983 = vmatprep.mubr.msk.bf16.mxu1 %vm471_vm1, %v4164_v41 }
  0x4d   : > { %2013 = vmatpush2.bf16.msra.mxu1 %v4190_v42  ;;  %2273 = vmatprep.subr.bf16.mxu0 %v5933_v2  ;;  %v4209_v42 = vld [vmem:[%s5914_s2 + $0x118] sm:$0xff]  }
  0x4e   : > { %2014 = vmatprep.subr.bf16.mxu1 %v5933_v2  ;;  %2274 = vmatpush2.bf16.msra.mxu0 %v4211_v10  ;;  %v4216_v10 = vld [vmem:[%s5914_s2 + $0x178] sm:$0xff]  }
  0x4f   : > { %2275 = vmatprep.subr.bf16.mxu0 %v5933_v2 }
  0x51   : > { %2015 = vmatpush2.bf16.msra.mxu1 %v4193_v43 }
  0x52   : > { %2016 = vmatprep.subr.bf16.mxu1 %v5933_v2  ;;  %2276 = vmatpush2.bf16.msra.mxu0 %v4212_v11 }
  0x53   : > { %3578 = vmatmul.mubr.msk.bf16.gmra.mxu0 %vm471_vm1, %v4151_v28  ;;  %3984 = vmatmul.mubr.msk.bf16.gmra.mxu1 %vm471_vm1, %v4165_v44 }
  0x54   : > { %712 = vmatprep.mubr.bf16.mxu0 %v5933_v2  ;;  %3987 = vmatprep.mubr.msk.bf16.mxu1 %vm471_vm1, %v4479_v45 }
  0x55   : > { %2017 = vmatpush2.bf16.msra.mxu1 %v4197_v46  ;;  %2759 = vmatprep.subr.bf16.mxu0 %v5933_v2 }
  0x56   : > { %2018 = vmatprep.subr.bf16.mxu1 %v5933_v2 }
  0x59   : > { %2019 = vmatpush2.bf16.msra.mxu1 %v4199_v48  ;;  %v4213_v48 = vld [vmem:[%s5914_s2 + $0x110] sm:$0xff]  }
  0x5a   : > { %2502 = vmatprep.subr.bf16.mxu1 %v5933_v2 }
  0x5b   : > { %3579 = vmatmul.mubr.msk.bf16.gmra.mxu0 %vm471_vm1, %v4153_v32  ;;  %3988 = vmatmul.mubr.msk.bf16.gmra.mxu1 %vm471_vm1, %v4169_v49 }
  0x5c   : > { %722 = vmatprep.mubr.bf16.mxu0 %v5933_v2  ;;  %3991 = vmatprep.mubr.msk.bf16.mxu1 %vm471_vm1, %v4500_v50 }
  0x63   : > { %3580 = vmatmul.mubr.msk.bf16.gmra.mxu0 %vm471_vm1, %v4156_v33  ;;  %3992 = vmatmul.mubr.msk.bf16.gmra.mxu1 %vm471_vm1, %v4508_v51 }
  0x64   : > { %732 = vmatprep.mubr.bf16.mxu0 %v5933_v2  ;;  %3995 = vmatprep.mubr.msk.bf16.mxu1 %vm471_vm1, %v4512_v52 }
  0x6b   : > { %3581 = vmatmul.mubr.msk.bf16.gmra.mxu0 %vm471_vm1, %v4158_v36  ;;  %3996 = vmatmul.mubr.msk.bf16.gmra.mxu1 %vm471_vm1, %v4525_v54  ;;  %v4207_v36 = vld [vmem:[%s5914_s2 + $0x120] sm:$0xff]  }
  0x6c   : > { %742 = vmatprep.mubr.bf16.mxu0 %v5933_v2  ;;  %3999 = vmatprep.mubr.msk.bf16.mxu1 %vm471_vm1, %v4528_v55 }
  0x73   : > { %3582 = vmatmul.mubr.msk.bf16.gmra.mxu0 %vm471_vm1, %v4161_v38  ;;  %4000 = vmatmul.mubr.msk.bf16.gmra.mxu1 %vm471_vm1, %v4537_v56 }
  0x74   : > { %752 = vmatprep.mubr.bf16.mxu0 %v5933_v2  ;;  %4003 = vmatprep.mubr.msk.bf16.mxu1 %vm471_vm1, %v4540_v57 }
  0x7b   : > { %3583 = vmatmul.mubr.msk.bf16.gmra.mxu0 %vm471_vm1, %v4162_v40  ;;  %4004 = vmatmul.mubr.msk.bf16.gmra.mxu1 %vm471_vm1, %v4552_v59 }
  0x7c   : > { %762 = vmatprep.mubr.bf16.mxu0 %v5933_v2  ;;  %4007 = vmatprep.mubr.msk.bf16.mxu1 %vm471_vm1, %v4556_v60 }
  0x83   : > { %3584 = vmatmul.mubr.msk.bf16.gmra.mxu0 %vm471_vm1, %v4164_v41  ;;  %4008 = vmatmul.mubr.msk.bf16.gmra.mxu1 %vm471_vm1, %v4565_v61 }
  0x84   : > { %772 = vmatprep.mubr.bf16.mxu0 %v5933_v2  ;;  %4011 = vmatprep.mubr.msk.bf16.mxu1 %vm471_vm1, %v4568_v62 }
  0x8b   : > { %3585 = vmatmul.mubr.msk.bf16.gmra.mxu0 %vm471_vm1, %v4165_v44  ;;  %4012 = vmatmul.mubr.msk.bf16.gmra.mxu1 %vm471_vm1, %v4580_v0 }
  0x8c   : > { %782 = vmatprep.mubr.bf16.mxu0 %v5933_v2  ;;  %4015 = vmatprep.mubr.msk.bf16.mxu1 %vm471_vm1, %v4583_v1 }
  0x93   : > { %3586 = vmatmul.mubr.msk.bf16.gmra.mxu0 %vm471_vm1, %v4479_v45  ;;  %4016 = vmatmul.mubr.msk.bf16.gmra.mxu1 %vm471_vm1, %v4594_v3 }
  0x94   : > { %792 = vmatprep.mubr.bf16.mxu0 %v5933_v2  ;;  %4019 = vmatprep.mubr.msk.bf16.mxu1 %vm471_vm1, %v4597_v4 }
  0x9b   : > { %3587 = vmatmul.mubr.msk.bf16.gmra.mxu0 %vm471_vm1, %v4169_v49  ;;  %4020 = vmatmul.mubr.msk.bf16.gmra.mxu1 %vm471_vm1, %v4609_v6 }
  0x9c   : > { %802 = vmatprep.mubr.bf16.mxu0 %v5933_v2  ;;  %4023 = vmatprep.mubr.msk.bf16.mxu1 %vm471_vm1, %v4613_v7 }
  0xa3   : > { %3588 = vmatmul.mubr.msk.bf16.gmra.mxu0 %vm471_vm1, %v4500_v50  ;;  %4024 = vmatmul.mubr.msk.bf16.gmra.mxu1 %vm471_vm1, %v4347_v9 }
  0xa4   : > { %812 = vmatprep.mubr.bf16.mxu0 %v5933_v2 }
  0xab   : > { %3589 = vmatmul.mubr.msk.bf16.gmra.mxu0 %vm471_vm1, %v4508_v51 }
  0xac   : > { %822 = vmatprep.mubr.bf16.mxu0 %v5933_v2 }
  0xb3   : > { %3590 = vmatmul.mubr.msk.bf16.gmra.mxu0 %vm471_vm1, %v4512_v52 }
  0xb4   : > { %832 = vmatprep.mubr.bf16.mxu0 %v5933_v2 }
  0xbb   : > { %3591 = vmatmul.mubr.msk.bf16.gmra.mxu0 %vm471_vm1, %v4525_v54  ;;  %v4214_v54 = vld [vmem:[%s5914_s2 + $0x108] sm:$0xff]  }
  0xbc   : > { %842 = vmatprep.mubr.bf16.mxu0 %v5933_v2 }
  0xc3   : > { %3592 = vmatmul.mubr.msk.bf16.gmra.mxu0 %vm471_vm1, %v4528_v55 }
  0xc4   : > { %852 = vmatprep.mubr.bf16.mxu0 %v5933_v2 }
  0xcb   : > { %3593 = vmatmul.mubr.msk.bf16.gmra.mxu0 %vm471_vm1, %v4537_v56 }
  0xcc   : > { %862 = vmatprep.mubr.bf16.mxu0 %v5933_v2 }
  0xd3   : > { %v624_v9 = vpop.f32.mrf.mxu0  ;;  %3594 = vmatmul.mubr.msk.bf16.gmra.mxu0 %vm471_vm1, %v4540_v57  ;;  %v4654_v15 = vpop.f32.mrf.mxu1 }
  0xd4   : > { %872 = vmatprep.mubr.bf16.mxu0 %v5933_v2  ;;  %6005 = vst [vmem:[#allocation2_spill] sm:$0xff] %v4654_v15  ;;  %v4221_v15 = vld [vmem:[%s5914_s2 + $0x1a8] sm:$0xff]  }
  0xd5   : > { %v626_v12 = vpop.f32.mrf.mxu0  ;;  %v4661_v20 = vpop.f32.mrf.mxu1 }
  0xd6   : > { %6006 = vst [vmem:[#allocation3_spill] sm:$0xff] %v4661_v20 }
  0xd7   : > { %v628_v13 = vpop.f32.mrf.mxu0  ;;  %v4664_v22 = vpop.f32.mrf.mxu1 }
  0xd8   : > { %v1304_v18 = vpack.c.bf16 %v628_v13, %v624_v9  ;;  %6007 = vst [vmem:[#allocation4_spill] sm:$0xff] %v4664_v22 }
  0xd9   : > { %v630_v14 = vpop.f32.mrf.mxu0  ;;  %v4672_v26 = vpop.f32.mrf.mxu1 }
  0xda   : > { %v1305_v16 = vpack.c.bf16 %v630_v14, %v626_v12  ;;  %6008 = vst [vmem:[#allocation5_spill] sm:$0xff] %v4672_v26 }
  0xdb   : > { %v634_v19 = vpop.f32.mrf.mxu0  ;;  %3595 = vmatmul.mubr.msk.bf16.gmra.mxu0 %vm471_vm1, %v4552_v59  ;;  %v4674_v28 = vpop.f32.mrf.mxu1 }
  0xdc   : > { %2020 = vmatprep.mubr.bf16.mxu1 %v1305_v16  ;;  %882 = vmatprep.mubr.bf16.mxu0 %v5933_v2  ;;  %v4218_v16 = vld [vmem:[%s5914_s2 + $0x170] sm:$0xff]  }
  0xdd   : > { %v636_v21 = vpop.f32.mrf.mxu0  ;;  %2021 = vmatmul.mubr.bf16.vlgmr.msra.gmra.mxu1 %v1304_v18  ;;  %v4682_v33 = vpop.f32.mrf.mxu1 }
  0xde   : > { %2503 = vmatpush1.bf16.msra.mxu1 %v4201_v17 }
  0xdf   : > { %v638_v25 = vpop.f32.mrf.mxu0  ;;  %2504 = vmatprep.subr.bf16.mxu1 %v5933_v2  ;;  %v4685_v35 = vpop.f32.mrf.mxu1 }
  0xe0   : > { %v1307_v31 = vpack.c.bf16 %v638_v25, %v634_v19 }
  0xe1   : > { %v640_v27 = vpop.f32.mrf.mxu0  ;;  %v4691_v38 = vpop.f32.mrf.mxu1 }
  0xe2   : > { %v1308_v29 = vpack.c.bf16 %v640_v27, %v636_v21  ;;  %2505 = vmatpush1.bf16.msra.mxu1 %v4203_v23  ;;  %v4220_v23 = vld [vmem:[%s5914_s2 + $0x168] sm:$0xff]  }
  0xe3   : > { %v644_v32 = vpop.f32.mrf.mxu0  ;;  %3596 = vmatmul.mubr.msk.bf16.gmra.mxu0 %vm471_vm1, %v4556_v60  ;;  %2506 = vmatprep.subr.bf16.mxu1 %v5933_v2  ;;  %v4693_v40 = vpop.f32.mrf.mxu1  ;;  %v4215_v60 = vld [vmem:[%s5914_s2 + $0x100] sm:$0xff]  }
  0xe4   : > { %2028 = vmatprep.mubr.bf16.mxu1 %v1308_v29  ;;  %892 = vmatprep.mubr.bf16.mxu0 %v5933_v2 }
  0xe5   : > { %v646_v34 = vpop.f32.mrf.mxu0  ;;  %2029 = vmatmul.mubr.bf16.gmra.mxu1 %v1307_v31  ;;  %v4704_v45 = vpop.f32.mrf.mxu1 }
  0xe6   : > { %2507 = vmatpush1.bf16.msra.mxu1 %v4205_v30 }
  0xe7   : > { %v648_v37 = vpop.f32.mrf.mxu0  ;;  %2508 = vmatprep.subr.bf16.mxu1 %v5933_v2  ;;  %v4710_v47 = vpop.f32.mrf.mxu1 }
  0xe8   : > { %v4700_v43 = vpack.c.bf16 %v648_v37, %v644_v32 }
  0xe9   : > { %v650_v39 = vpop.f32.mrf.mxu0  ;;  %v4715_v50 = vpop.f32.mrf.mxu1 }
  0xea   : > { %v4695_v41 = vpack.c.bf16 %v650_v39, %v646_v34  ;;  %2509 = vmatpush1.bf16.msra.mxu1 %v4207_v36 }
  0xeb   : > { %v654_v44 = vpop.f32.mrf.mxu0  ;;  %3597 = vmatmul.mubr.msk.bf16.gmra.mxu0 %vm471_vm1, %v4565_v61  ;;  %2510 = vmatprep.subr.bf16.mxu1 %v5933_v2  ;;  %v4718_v52 = vpop.f32.mrf.mxu1 }
  0xec   : > { %2034 = vmatprep.mubr.bf16.mxu1 %v4695_v41  ;;  %902 = vmatprep.mubr.bf16.mxu0 %v5933_v2 }
  0xed   : > { %v656_v46 = vpop.f32.mrf.mxu0  ;;  %2035 = vmatmul.mubr.bf16.gmra.mxu1 %v4700_v43  ;;  %v4729_v57 = vpop.f32.mrf.mxu1 }
  0xee   : > { %2511 = vmatpush1.bf16.msra.mxu1 %v4209_v42 }
  0xef   : > { %v658_v49 = vpop.f32.mrf.mxu0  ;;  %2512 = vmatprep.subr.bf16.mxu1 %v5933_v2  ;;  %v4735_v59 = vpop.f32.mrf.mxu1 }
  0xf0   : > { %v4725_v55 = vpack.c.bf16 %v658_v49, %v654_v44  ;;  %v4222_v49 = vld [vmem:[%s5914_s2 + $0x160] sm:$0xff]  }
  0xf1   : > { %v660_v51 = vpop.f32.mrf.mxu0 }
  0xf2   : > { %v4720_v53 = vpack.c.bf16 %v660_v51, %v656_v46  ;;  %2513 = vmatpush1.bf16.msra.mxu1 %v4213_v48 }
  0xf3   : > { %v664_v56 = vpop.f32.mrf.mxu0  ;;  %3598 = vmatmul.mubr.msk.bf16.gmra.mxu0 %vm471_vm1, %v4568_v62  ;;  %2514 = vmatprep.subr.bf16.mxu1 %v5933_v2  ;;  %v4740_v62 = vpop.f32.mrf.mxu1 }
  0xf4   : > { %2042 = vmatprep.mubr.bf16.mxu1 %v4720_v53  ;;  %912 = vmatprep.mubr.bf16.mxu0 %v5933_v2 }
  0xf5   : > { %v666_v58 = vpop.f32.mrf.mxu0  ;;  %2043 = vmatmul.mubr.bf16.gmra.mxu1 %v4725_v55  ;;  %v4743_v5 = vpop.f32.mrf.mxu1 }
  0xf6   : > { %2515 = vmatpush1.bf16.msra.mxu1 %v4214_v54 }
  0xf7   : > { %v668_v61 = vpop.f32.mrf.mxu0  ;;  %2516 = vmatprep.subr.bf16.mxu1 %v5933_v2  ;;  %v4754_v12 = vpop.f32.mrf.mxu1 }
  0xf8   : > { %v4750_v11 = vpack.c.bf16 %v668_v61, %v664_v56 }
  0xf9   : > { %v670_v63 = vpop.f32.mrf.mxu0  ;;  %v4760_v14 = vpop.f32.mrf.mxu1 }
  0xfa   : > { %v4745_v8 = vpack.c.bf16 %v670_v63, %v666_v58  ;;  %2517 = vmatpush1.bf16.msra.mxu1 %v4215_v60  ;;  %6009 = vst [vmem:[#allocation6_spill] sm:$0xff] %v4750_v11 }
  0xfb   : > { %v674_v9 = vpop.f32.mrf.mxu0  ;;  %3599 = vmatmul.mubr.msk.bf16.gmra.mxu0 %vm471_vm1, %v4580_v0  ;;  %2518 = vmatprep.subr.bf16.mxu1 %v5933_v2  ;;  %v4765_v0 = vpop.f32.mrf.mxu1 }
  0xfc   : > { %2048 = vmatprep.mubr.bf16.mxu1 %v4745_v8  ;;  %922 = vmatprep.mubr.bf16.mxu0 %v5933_v2 }
  0xfd   : > { %v676_v13 = vpop.f32.mrf.mxu0  ;;  %2049 = vmatmul.mubr.bf16.gmra.mxu1 %v4750_v11  ;;  %v4768_v19 = vpop.f32.mrf.mxu1 }
  0xfe   : > { %2519 = vmatpush2.bf16.msra.mxu1 %v4216_v10 }
  0xff   : > { %v678_v17 = vpop.f32.mrf.mxu0  ;;  %2520 = vmatprep.subr.bf16.mxu1 %v5933_v2  ;;  %v4779_v29 = vpop.f32.mrf.mxu1 }
 0x100   : > { %v4775_v25 = vpack.c.bf16 %v678_v17, %v674_v9 }
 0x101   : > { %v680_v18 = vpop.f32.mrf.mxu0  ;;  %v4785_v31 = vpop.f32.mrf.mxu1 }
 0x102   : > { %v4770_v21 = vpack.c.bf16 %v680_v18, %v676_v13  ;;  %2521 = vmatpush2.bf16.msra.mxu1 %v4218_v16  ;;  %6010 = vst [vmem:[#allocation7_spill] sm:$0xff] %v4775_v25 }
 0x103   : > { %v684_v27 = vpop.f32.mrf.mxu0  ;;  %3600 = vmatmul.mubr.msk.bf16.gmra.mxu0 %vm471_vm1, %v4583_v1  ;;  %2522 = vmatprep.subr.bf16.mxu1 %v5933_v2  ;;  %v4787_v34 = vpop.f32.mrf.mxu1 }
 0x104   : > { %2056 = vmatprep.mubr.bf16.mxu1 %v4770_v21  ;;  %932 = vmatprep.mubr.bf16.mxu0 %v5933_v2 }
 0x105   : > { %v686_v30 = vpop.f32.mrf.mxu0  ;;  %2057 = vmatmul.mubr.bf16.gmra.mxu1 %v4775_v25  ;;  %v3977_v36 = vpop.f32.mrf.mxu1 }
 0x106   : > { %2523 = vmatpush2.bf16.msra.mxu1 %v4220_v23 }
 0x107   : > { %v688_v32 = vpop.f32.mrf.mxu0  ;;  %2524 = vmatprep.subr.bf16.mxu1 %v5933_v2  ;;  %v4796_v44 = vpop.f32.mrf.mxu1 }
 0x108   : > { %v4792_v39 = vpack.c.bf16 %v688_v32, %v684_v27 }
 0x109   : > { %v690_v1 = vpop.f32.mrf.mxu0  ;;  %v3978_v48 = vpop.f32.mrf.mxu1 }
 0x10a   : > { %v4790_v37 = vpack.c.bf16 %v690_v1, %v686_v30  ;;  %6012 = vst [vmem:[#allocation9_spill] sm:$0xff] %v4792_v39  ;;  %v4804_v51 = vpack.c.bf16 %v3978_v48, %v3977_v36  ;;  %2525 = vmatpush2.bf16.msra.mxu1 %v4222_v49 }
 0x10b   : > { %v694_v42 = vpop.f32.mrf.mxu0  ;;  %3601 = vmatmul.mubr.msk.bf16.gmra.mxu0 %vm471_vm1, %v4594_v3  ;;  %v4806_v56 = vpop.f32.mrf.mxu1  ;;  %2526 = vmatprep.subr.bf16.mxu1 %v5933_v2 }
 0x10c   : > { %6011 = vst [vmem:[#allocation8_spill] sm:$0xff] %v4790_v37  ;;  %2062 = vmatprep.mubr.bf16.mxu1 %v4790_v37  ;;  %942 = vmatprep.mubr.bf16.mxu0 %v5933_v2  ;;  %6013 = vst [vmem:[#allocation10_spill] sm:$0xff] %v4804_v51 }
 0x10d   : > { %v696_v46 = vpop.f32.mrf.mxu0  ;;  %2063 = vmatmul.mubr.bf16.gmra.mxu1 %v4792_v39  ;;  %v3981_v58 = vpop.f32.mrf.mxu1 }
 0x10f   : > { %v698_v54 = vpop.f32.mrf.mxu0  ;;  %v4815_v10 = vpop.f32.mrf.mxu1 }
 0x110   : > { %v4811_v61 = vpack.c.bf16 %v698_v54, %v694_v42 }
 0x111   : > { %v700_v3 = vpop.f32.mrf.mxu0  ;;  %v3982_v13 = vpop.f32.mrf.mxu1 }
 0x112   : > { %v4809_v60 = vpack.c.bf16 %v700_v3, %v696_v46  ;;  %6015 = vst [vmem:[#allocation12_spill] sm:$0xff] %v4811_v61  ;;  %v4820_v16 = vpack.c.bf16 %v3982_v13, %v3981_v58  ;;  %v4224_v46 = vld [vmem:[%s5914_s2 + $0x158] sm:$0xff]  }
 0x113   : > { %v704_v63 = vpop.f32.mrf.mxu0  ;;  %3602 = vmatmul.mubr.msk.bf16.gmra.mxu0 %vm471_vm1, %v4597_v4  ;;  %v4822_v18 = vpop.f32.mrf.mxu1  ;;  %2527 = vmatpush2.bf16.msra.mxu1 %v4224_v46 }
 0x114   : > { %6014 = vst [vmem:[#allocation11_spill] sm:$0xff] %v4809_v60  ;;  %2070 = vmatprep.mubr.bf16.mxu1 %v4809_v60  ;;  %952 = vmatprep.mubr.bf16.mxu0 %v5933_v2  ;;  %6016 = vst [vmem:[#allocation13_spill] sm:$0xff] %v4820_v16 }
 0x115   : > { %v706_v9 = vpop.f32.mrf.mxu0  ;;  %2071 = vmatmul.mubr.bf16.gmra.mxu1 %v4811_v61  ;;  %v3985_v27 = vpop.f32.mrf.mxu1  ;;  %2528 = vmatprep.subr.bf16.mxu1 %v5933_v2 }
 0x117   : > { %v708_v17 = vpop.f32.mrf.mxu0  ;;  %v4830_v1 = vpop.f32.mrf.mxu1 }
 0x118   : > { %v4826_v4 = vpack.c.bf16 %v708_v17, %v704_v63 }
 0x119   : > { %v710_v23 = vpop.f32.mrf.mxu0  ;;  %v3986_v42 = vpop.f32.mrf.mxu1 }
 0x11a   : > { %v4824_v30 = vpack.c.bf16 %v710_v23, %v706_v9  ;;  %6018 = vst [vmem:[#allocation15_spill] sm:$0xff] %v4826_v4  ;;  %v4838_v48 = vpack.c.bf16 %v3986_v42, %v3985_v27 }
 0x11b   : > { %v714_v32 = vpop.f32.mrf.mxu0  ;;  %3603 = vmatmul.mubr.msk.bf16.gmra.mxu0 %vm471_vm1, %v4609_v6  ;;  %v4840_v54 = vpop.f32.mrf.mxu1 }
 0x11c   : > { %6017 = vst [vmem:[#allocation14_spill] sm:$0xff] %v4824_v30  ;;  %2076 = vmatprep.mubr.bf16.mxu1 %v4824_v30  ;;  %962 = vmatprep.mubr.bf16.mxu0 %v5933_v2  ;;  %6019 = vst [vmem:[#allocation16_spill] sm:$0xff] %v4838_v48 }
 0x11d   : > { %v716_v36 = vpop.f32.mrf.mxu0  ;;  %2077 = vmatmul.mubr.bf16.gmra.mxu1 %v4826_v4  ;;  %v3989_v3 = vpop.f32.mrf.mxu1 }
 0x11f   : > { %v718_v49 = vpop.f32.mrf.mxu0  ;;  %v4849_v13 = vpop.f32.mrf.mxu1 }
 0x120   : > { %v4845_v63 = vpack.c.bf16 %v718_v49, %v714_v32  ;;  %v1306_v32 = vpack.c.bf16 %v4691_v38, %v4682_v33  ;;  %v4217_v49 = vld [vmem:[%s5914_s2 + $0x1b8] sm:$0xff]   ;;  %v4219_v38 = vld [vmem:[%s5914_s2 + $0x1b0] sm:$0xff]  }
 0x121   : > { %v720_v6 = vpop.f32.mrf.mxu0  ;;  %v3990_v23 = vpop.f32.mrf.mxu1 }
 0x122   : > { %v4843_v58 = vpack.c.bf16 %v720_v6, %v716_v36  ;;  %6021 = vst [vmem:[#allocation18_spill] sm:$0xff] %v4845_v63  ;;  %v4854_v27 = vpack.c.bf16 %v3990_v23, %v3989_v3 }
 0x123   : > { %v724_v9 = vpop.f32.mrf.mxu0  ;;  %3604 = vmatmul.mubr.msk.bf16.gmra.mxu0 %vm471_vm1, %v4613_v7  ;;  %v4856_v42 = vpop.f32.mrf.mxu1 }
 0x124   : > { %6020 = vst [vmem:[#allocation17_spill] sm:$0xff] %v4843_v58  ;;  %2084 = vmatprep.mubr.bf16.mxu1 %v4843_v58  ;;  %2277 = vmatprep.mubr.bf16.mxu0 %v4700_v43  ;;  %6022 = vst [vmem:[#allocation19_spill] sm:$0xff] %v4854_v27 }
 0x125   : > { %v726_v17 = vpop.f32.mrf.mxu0  ;;  %2085 = vmatmul.mubr.bf16.gmra.mxu1 %v4845_v63  ;;  %v3993_v7 = vpop.f32.mrf.mxu1 }
 0x127   : > { %v728_v36 = vpop.f32.mrf.mxu0  ;;  %v4867_v3 = vpop.f32.mrf.mxu1 }
 0x128   : > { %v4865_v43 = vpack.c.bf16 %v728_v36, %v724_v9  ;;  %v4226_v9 = vld [vmem:[%s5914_s2 + $0x150] sm:$0xff]  }
 0x129   : > { %v730_v46 = vpop.f32.mrf.mxu0  ;;  %v3994_v33 = vpop.f32.mrf.mxu1  ;;  %2529 = vmatpush2.bf16.msra.mxu1 %v4226_v9 }
 0x12a   : > { %v4863_v6 = vpack.c.bf16 %v730_v46, %v726_v17  ;;  %6024 = vst [vmem:[#allocation21_spill] sm:$0xff] %v4865_v43  ;;  %v4878_v17 = vpack.c.bf16 %v3994_v33, %v3993_v7  ;;  %2530 = vmatprep.subr.bf16.mxu1 %v5933_v2 }
 0x12b   : > { %v734_v24 = vpop.f32.mrf.mxu0  ;;  %2278 = vmatmul.mubr.bf16.vlgmr.msra.gmra.mxu0 %v1306_v32  ;;  %v4881_v32 = vpop.f32.mrf.mxu1 }
 0x12c   : > { %6023 = vst [vmem:[#allocation20_spill] sm:$0xff] %v4863_v6  ;;  %2090 = vmatprep.mubr.bf16.mxu1 %v4863_v6  ;;  %2285 = vmatprep.mubr.bf16.mxu0 %v4725_v55  ;;  %v1309_v55 = vpack.c.bf16 %v4685_v35, %v4674_v28 }
 0x12d   : > { %v736_v23 = vpop.f32.mrf.mxu0  ;;  %2091 = vmatmul.mubr.bf16.gmra.mxu1 %v4865_v43  ;;  %2760 = vmatpush1.bf16.msra.mxu0 %v4217_v49  ;;  %v3997_v49 = vpop.f32.mrf.mxu1 }
 0x12e   : > { %2761 = vmatprep.subr.bf16.mxu0 %v5933_v2 }
 0x12f   : > { %v738_v36 = vpop.f32.mrf.mxu0  ;;  %v4894_v9 = vpop.f32.mrf.mxu1 }
 0x130   : > { %v4892_v33 = vpack.c.bf16 %v738_v36, %v734_v24 }
 0x131   : > { %v740_v46 = vpop.f32.mrf.mxu0  ;;  %2762 = vmatpush1.bf16.msra.mxu0 %v4219_v38  ;;  %v3998_v35 = vpop.f32.mrf.mxu1 }
 0x132   : > { %v4889_v7 = vpack.c.bf16 %v740_v46, %v736_v23  ;;  %2763 = vmatprep.subr.bf16.mxu0 %v5933_v2  ;;  %v4223_v23 = vld [vmem:[%s5914_s2 + $0x1a0] sm:$0xff]   ;;  %v4902_v38 = vpack.c.bf16 %v3998_v35, %v3997_v49 }
 0x133   : > { %v744_v22 = vpop.f32.mrf.mxu0  ;;  %2286 = vmatmul.mubr.bf16.gmra.mxu0 %v1309_v55  ;;  %v4905_v36 = vpop.f32.mrf.mxu1  ;;  %v4909_v55 = vpack.c.bf16 %v4715_v50, %v4704_v45 }
 0x134   : > { %6025 = vst [vmem:[#allocation22_spill] sm:$0xff] %v4889_v7  ;;  %2098 = vmatprep.mubr.bf16.mxu1 %v4889_v7  ;;  %2291 = vmatprep.mubr.bf16.mxu0 %v4750_v11 }
 0x135   : > { %v746_v28 = vpop.f32.mrf.mxu0  ;;  %2099 = vmatmul.mubr.bf16.gmra.mxu1 %v4892_v33  ;;  %2764 = vmatpush1.bf16.msra.mxu0 %v4221_v15  ;;  %v4001_v26 = vpop.f32.mrf.mxu1  ;;  %v4225_v15 = vld [vmem:[%s5914_s2 + $0x198] sm:$0xff]  }
 0x136   : > { %2765 = vmatprep.subr.bf16.mxu0 %v5933_v2 }
 0x137   : > { %v748_v24 = vpop.f32.mrf.mxu0  ;;  %v4920_v11 = vpop.f32.mrf.mxu1 }
 0x138   : > { %v4917_v49 = vpack.c.bf16 %v748_v24, %v744_v22  ;;  %v4228_v22 = vld [vmem:[%s5914_s2 + $0x148] sm:$0xff]  }
 0x139   : > { %v750_v46 = vpop.f32.mrf.mxu0  ;;  %2766 = vmatpush1.bf16.msra.mxu0 %v4223_v23  ;;  %v4002_v50 = vpop.f32.mrf.mxu1  ;;  %2531 = vmatpush2.bf16.msra.mxu1 %v4228_v22 }
 0x13a   : > { %v4914_v20 = vpack.c.bf16 %v750_v46, %v746_v28  ;;  %2767 = vmatprep.subr.bf16.mxu0 %v5933_v2  ;;  %v4227_v28 = vld [vmem:[%s5914_s2 + $0x190] sm:$0xff]   ;;  %v4931_v23 = vpack.c.bf16 %v4002_v50, %v4001_v26  ;;  %2532 = vmatprep.subr.bf16.mxu1 %v5933_v2  ;;  %v4229_v26 = vld [vmem:[%s5914_s2 + $0x188] sm:$0xff]  }
 0x13b   : > { %v754_v35 = vpop.f32.mrf.mxu0  ;;  %2292 = vmatmul.mubr.bf16.gmra.mxu0 %v4909_v55  ;;  %v4934_v46 = vpop.f32.mrf.mxu1 }
 0x13c   : > { %6026 = vst [vmem:[#allocation23_spill] sm:$0xff] %v4914_v20  ;;  %2104 = vmatprep.mubr.bf16.mxu1 %v4914_v20  ;;  %2299 = vmatprep.mubr.bf16.mxu0 %v4775_v25 }
 0x13d   : > { %v756_v45 = vpop.f32.mrf.mxu0  ;;  %2105 = vmatmul.mubr.bf16.gmra.mxu1 %v4917_v49  ;;  %2768 = vmatpush1.bf16.msra.mxu0 %v4225_v15  ;;  %v4939_v15 = vpack.c.bf16 %v4710_v47, %v4693_v40  ;;  %v4005_v20 = vpop.f32.mrf.mxu1 }
 0x13e   : > { %2769 = vmatprep.subr.bf16.mxu0 %v5933_v2 }
 0x13f   : > { %v758_v24 = vpop.f32.mrf.mxu0  ;;  %v4950_v6 = vpop.f32.mrf.mxu1 }
 0x140   : > { %v4947_v50 = vpack.c.bf16 %v758_v24, %v754_v35 }
 0x141   : > { %v760_v25 = vpop.f32.mrf.mxu0  ;;  %2770 = vmatpush1.bf16.msra.mxu0 %v4227_v28  ;;  %v4006_v47 = vpop.f32.mrf.mxu1  ;;  %v4962_v28 = vpack.c.bf16 %v4740_v62, %v4729_v57  ;;  %v4230_v62 = vld [vmem:[%s5914_s2 + $0x140] sm:$0xff]  }
 0x142   : > { %v4941_v7 = vpack.c.bf16 %v760_v25, %v756_v45  ;;  %2771 = vmatprep.subr.bf16.mxu0 %v5933_v2  ;;  %v4955_v25 = vpack.c.bf16 %v4006_v47, %v4005_v20  ;;  %2533 = vmatpush2.bf16.msra.mxu1 %v4230_v62  ;;  %v6036_v62 = vmov 0  }
 0x143   : > { %v764_v22 = vpop.f32.mrf.mxu0  ;;  %2300 = vmatmul.mubr.bf16.gmra.mxu0 %v4939_v15  ;;  %v4958_v45 = vpop.f32.mrf.mxu1 }
 0x144   : > { %6027 = vst [vmem:[#allocation24_spill] sm:$0xff] %v4941_v7  ;;  %2112 = vmatprep.mubr.bf16.mxu1 %v4941_v7  ;;  %2305 = vmatprep.mubr.bf16.mxu0 %v4792_v39 }
 0x145   : > { %v766_v40 = vpop.f32.mrf.mxu0  ;;  %2113 = vmatmul.mubr.bf16.gmra.mxu1 %v4947_v50  ;;  %2772 = vmatpush1.bf16.msra.mxu0 %v4229_v26  ;;  %v4009_v7 = vpop.f32.mrf.mxu1 }
 0x146   : > { %2773 = vmatprep.subr.bf16.mxu0 %v5933_v2 }
 0x147   : > { %v768_v35 = vpop.f32.mrf.mxu0  ;;  %v4969_v20 = vpop.f32.mrf.mxu1 }
 0x148   : > { %v4966_v39 = vpack.c.bf16 %v768_v35, %v764_v22  ;;  %v4983_v35 = vpack.c.bf16 %v4735_v59, %v4718_v52 }
 0x149   : > { %v770_v24 = vpop.f32.mrf.mxu0  ;;  %v4010_v57 = vpop.f32.mrf.mxu1 }
 0x14a   : > { %v4964_v58 = vpack.c.bf16 %v770_v24, %v766_v40  ;;  %6029 = vst [vmem:[#allocation26_spill] sm:$0xff] %v4966_v39  ;;  %v4977_v40 = vpack.c.bf16 %v4010_v57, %v4009_v7  ;;  %6031 = vst [vmem:[#allocation28_spill] sm:$0xff] %v4983_v35 }
 0x14b   : > { %v774_v30 = vpop.f32.mrf.mxu0  ;;  %2306 = vmatmul.mubr.bf16.gmra.mxu0 %v4962_v28  ;;  %v4979_v47 = vpop.f32.mrf.mxu1 }
 0x14c   : > { %6028 = vst [vmem:[#allocation25_spill] sm:$0xff] %v4964_v58  ;;  %2118 = vmatprep.mubr.bf16.mxu1 %v4964_v58  ;;  %2313 = vmatprep.mubr.bf16.mxu0 %v4811_v61  ;;  %6030 = vst [vmem:[#allocation27_spill] sm:$0xff] %v4977_v40  ;;  %v4231_v58 = vld [vmem:[%s5914_s2 + $0x180] sm:$0xff]  }
 0x14d   : > { %v776_v26 = vpop.f32.mrf.mxu0  ;;  %2119 = vmatmul.mubr.bf16.gmra.mxu1 %v4966_v39  ;;  %v4013_v2 = vpop.f32.mrf.mxu1  ;;  %2774 = vmatpush1.bf16.msra.mxu0 %v4231_v58 }
 0x14e   : > { %2775 = vmatprep.subr.bf16.mxu0 %v6036_v62 }
 0x14f   : > { %v778_v22 = vpop.f32.mrf.mxu0  ;;  %v4993_v57 = vpop.f32.mrf.mxu1 }
 0x150   : > { %v4990_v60 = vpack.c.bf16 %v778_v22, %v774_v30  ;;  %6034 = vst [vmem:[#allocation31_spill] sm:$0xff] %v4993_v57 }
 0x151   : > { %v780_v24 = vpop.f32.mrf.mxu0  ;;  %v4014_v59 = vpop.f32.mrf.mxu1 }
 0x152   : > { %v4985_v61 = vpack.c.bf16 %v780_v24, %v776_v26  ;;  %6033 = vst [vmem:[#allocation30_spill] sm:$0xff] %v4990_v60  ;;  %v4998_v26 = vpack.c.bf16 %v4014_v59, %v4013_v2  ;;  %v5005_v24 = vpack.c.bf16 %v4765_v0, %v4754_v12  ;;  %v5019_v12 = vld [vmem:[%s5914_s2 + $0x238] sm:$0xff]   ;;  %v5029_v59 = vpack.c.bf16 %v4760_v14, %v4743_v5 }
 0x153   : > { %v784_v7 = vpop.f32.mrf.mxu0  ;;  %2314 = vmatmul.mubr.bf16.gmra.mxu0 %v4983_v35  ;;  %v5001_v22 = vpop.f32.mrf.mxu1  ;;  %4027 = vmatprep.subr.bf16.mxu1 %v5019_v12 }
 0x154   : > { %6032 = vst [vmem:[#allocation29_spill] sm:$0xff] %v4985_v61  ;;  %2126 = vmatprep.mubr.bf16.mxu1 %v4985_v61  ;;  %2319 = vmatprep.mubr.bf16.mxu0 %v4826_v4  ;;  %6035 = vst [vmem:[#allocation32_spill] sm:$0xff] %v4998_v26 }
 0x155   : > { %v786_v52 = vpop.f32.mrf.mxu0  ;;  %2127 = vmatmul.mubr.bf16.gmra.mxu1 %v4990_v60  ;;  %6037 = vst [vmem:[#allocation33_spill] sm:$0xff] %v5005_v24  ;;  %v4017_v61 = vpop.f32.mrf.mxu1  ;;  %6043 = vst [vmem:[#allocation39_spill] sm:$0xff] %v5029_v59 }
 0x157   : > { %v788_v30 = vpop.f32.mrf.mxu0  ;;  %v5012_v2 = vpop.f32.mrf.mxu1 }
 0x158   : > { %v5009_v4 = vpack.c.bf16 %v788_v30, %v784_v7  ;;  %6040 = vst [vmem:[#allocation36_spill] sm:$0xff] %v5012_v2  ;;  %v4233_v2 = vld [vmem:[%s5914_s2 + $0x1f8] sm:$0xff]  }
 0x159   : > { %v790_v57 = vpop.f32.mrf.mxu0  ;;  %v4018_v58 = vpop.f32.mrf.mxu1  ;;  %2776 = vmatpush2.bf16.msra.mxu0 %v4233_v2 }
 0x15a   : > { %v5007_v40 = vpack.c.bf16 %v790_v57, %v786_v52  ;;  %6039 = vst [vmem:[#allocation35_spill] sm:$0xff] %v5009_v4  ;;  %v5022_v7 = vpack.c.bf16 %v4018_v58, %v4017_v61  ;;  %2777 = vmatprep.subr.bf16.mxu0 %v6036_v62 }
 0x15b   : > { %v794_v37 = vpop.f32.mrf.mxu0  ;;  %2320 = vmatmul.mubr.bf16.gmra.mxu0 %v5005_v24  ;;  %v5025_v52 = vpop.f32.mrf.mxu1 }
 0x15c   : > { %6038 = vst [vmem:[#allocation34_spill] sm:$0xff] %v5007_v40  ;;  %2132 = vmatprep.mubr.bf16.mxu1 %v5007_v40  ;;  %2327 = vmatprep.mubr.bf16.mxu0 %v4845_v63  ;;  %6041 = vst [vmem:[#allocation37_spill] sm:$0xff] %v5022_v7 }
 0x15d   : > { %v796_v0 = vpop.f32.mrf.mxu0  ;;  %2133 = vmatmul.mubr.bf16.gmra.mxu1 %v5009_v4  ;;  %6042 = vst [vmem:[#allocation38_spill] sm:$0xff] %v5025_v52  ;;  %v4021_v63 = vpop.f32.mrf.mxu1 }
 0x15f   : > { %v798_v57 = vpop.f32.mrf.mxu0  ;;  %v5039_v58 = vpop.f32.mrf.mxu1 }
 0x160   : > { %v5036_v26 = vpack.c.bf16 %v798_v57, %v794_v37  ;;  %6046 = vst [vmem:[#allocation42_spill] sm:$0xff] %v5039_v58 }
 0x161   : > { %v800_v30 = vpop.f32.mrf.mxu0  ;;  %v4022_v14 = vpop.f32.mrf.mxu1 }
 0x162   : > { %v5031_v40 = vpack.c.bf16 %v800_v30, %v796_v0  ;;  %6045 = vst [vmem:[#allocation41_spill] sm:$0xff] %v5036_v26  ;;  %v5044_v0 = vpack.c.bf16 %v4022_v14, %v4021_v63  ;;  %v5051_v30 = vpack.c.bf16 %v4787_v34, %v4779_v29  ;;  %v4234_v14 = vld [vmem:[%s5914_s2 + $0x1f0] sm:$0xff]  }
 0x163   : > { %v804_v61 = vpop.f32.mrf.mxu0  ;;  %2328 = vmatmul.mubr.bf16.gmra.mxu0 %v5029_v59  ;;  %v5047_v57 = vpop.f32.mrf.mxu1 }
 0x164   : > { %6044 = vst [vmem:[#allocation40_spill] sm:$0xff] %v5031_v40  ;;  %2140 = vmatprep.mubr.bf16.mxu1 %v5031_v40  ;;  %2333 = vmatprep.mubr.bf16.mxu0 %v4865_v43  ;;  %6047 = vst [vmem:[#allocation43_spill] sm:$0xff] %v5044_v0 }
 0x165   : > { %v806_v5 = vpop.f32.mrf.mxu0  ;;  %2141 = vmatmul.mubr.bf16.gmra.mxu1 %v5036_v26  ;;  %6048 = vst [vmem:[#allocation44_spill] sm:$0xff] %v5047_v57  ;;  %6049 = vst [vmem:[#allocation45_spill] sm:$0xff] %v5051_v30  ;;  %v5053_v40 = vpop.f32.mrf.mxu1  ;;  %2778 = vmatpush2.bf16.msra.mxu0 %v4234_v14 }
 0x166   : > { %6050 = vst [vmem:[#allocation46_spill] sm:$0xff] %v5053_v40  ;;  %2779 = vmatprep.subr.bf16.mxu0 %v6036_v62 }
 0x167   : > { %v808_v37 = vpop.f32.mrf.mxu0  ;;  %v5060_v63 = vpop.f32.mrf.mxu1 }
 0x168   : > { %v5057_v7 = vpack.c.bf16 %v808_v37, %v804_v61  ;;  %6052 = vst [vmem:[#allocation48_spill] sm:$0xff] %v5060_v63  ;;  %v5071_v61 = vpack.c.bf16 %v4785_v31, %v4768_v19  ;;  %v5087_v31 = vpack.c.bf16 %v4806_v56, %v4796_v44  ;;  %v4236_v44 = vld [vmem:[%s5914_s2 + $0x1e8] sm:$0xff]  }
 0x169   : > { %v810_v58 = vpop.f32.mrf.mxu0  ;;  %v5065_v29 = vpop.f32.mrf.mxu1  ;;  %2780 = vmatpush2.bf16.msra.mxu0 %v4236_v44 }
 0x16a   : > { %v5055_v43 = vpack.c.bf16 %v810_v58, %v806_v5  ;;  %6051 = vst [vmem:[#allocation47_spill] sm:$0xff] %v5057_v7  ;;  %6053 = vst [vmem:[#allocation49_spill] sm:$0xff] %v5065_v29  ;;  %2781 = vmatprep.subr.bf16.mxu0 %v6036_v62 }
 0x16b   : > { %v814_v52 = vpop.f32.mrf.mxu0  ;;  %2334 = vmatmul.mubr.bf16.gmra.mxu0 %v5051_v30  ;;  %6054 = vst [vmem:[#allocation50_spill] sm:$0xff] %v5071_v61  ;;  %6056 = vst [vmem:[#allocation52_spill] sm:$0xff] %v5087_v31 }
 0x16c   : > { %2146 = vmatprep.mubr.bf16.mxu1 %v5055_v43  ;;  %2341 = vmatprep.mubr.bf16.mxu0 %v4892_v33 }
 0x16d   : > { %v816_v2 = vpop.f32.mrf.mxu0  ;;  %2147 = vmatmul.mubr.bf16.gmra.mxu1 %v5057_v7 }
 0x16f   : > { %v818_v58 = vpop.f32.mrf.mxu0 }
 0x170   : > { %v5078_v63 = vpack.c.bf16 %v818_v58, %v814_v52 }
 0x171   : > { %v820_v5 = vpop.f32.mrf.mxu0 }
 0x172   : > { %v5076_v37 = vpack.c.bf16 %v820_v5, %v816_v2  ;;  %6055 = vst [vmem:[#allocation51_spill] sm:$0xff] %v5078_v63 }
 0x173   : > { %v824_v0 = vpop.f32.mrf.mxu0  ;;  %2342 = vmatmul.mubr.bf16.gmra.mxu0 %v5071_v61 }
 0x174   : > { %2154 = vmatprep.mubr.bf16.mxu1 %v5076_v37  ;;  %2347 = vmatprep.mubr.bf16.mxu0 %v4917_v49 }
 0x175   : > { %v826_v34 = vpop.f32.mrf.mxu0  ;;  %2155 = vmatmul.mubr.bf16.gmra.mxu1 %v5078_v63 }
 0x177   : > { %v828_v19 = vpop.f32.mrf.mxu0 }
 0x178   : > { %v5091_v58 = vpack.c.bf16 %v828_v19, %v824_v0 }
 0x179   : > { %v830_v52 = vpop.f32.mrf.mxu0 }
 0x17a   : > { %v5089_v2 = vpack.c.bf16 %v830_v52, %v826_v34 }
 0x17b   : > { %v834_v5 = vpop.f32.mrf.mxu0  ;;  %2348 = vmatmul.mubr.bf16.gmra.mxu0 %v5087_v31 }
 0x17c   : > { %2160 = vmatprep.mubr.bf16.mxu1 %v5089_v2  ;;  %2355 = vmatprep.mubr.bf16.mxu0 %v4947_v50 }
 0x17d   : > { %v836_v14 = vpop.f32.mrf.mxu0  ;;  %2161 = vmatmul.mubr.bf16.gmra.mxu1 %v5091_v58 }
 0x17f   : > { %v838_v40 = vpop.f32.mrf.mxu0 }
 0x180   : > { %v5102_v0 = vpack.c.bf16 %v838_v40, %v834_v5 }
 0x181   : > { %v840_v29 = vpop.f32.mrf.mxu0 }
 0x182   : > { %v5100_v56 = vpack.c.bf16 %v840_v29, %v836_v14  ;;  %6058 = vst [vmem:[#allocation54_spill] sm:$0xff] %v5102_v0  ;;  %v5111_v29 = vpack.c.bf16 %v4822_v18, %v4815_v10  ;;  %v4237_v10 = vld [vmem:[%s5914_s2 + $0x1e0] sm:$0xff]  }
 0x183   : > { %v844_v34 = vpop.f32.mrf.mxu0  ;;  %2356 = vmatmul.mubr.bf16.gmra.mxu0 %v4804_v51 }
 0x184   : > { %6057 = vst [vmem:[#allocation53_spill] sm:$0xff] %v5100_v56  ;;  %2168 = vmatprep.mubr.bf16.mxu1 %v5100_v56  ;;  %2361 = vmatprep.mubr.bf16.mxu0 %v4966_v39  ;;  %6059 = vst [vmem:[#allocation55_spill] sm:$0xff] %v5111_v29 }
 0x185   : > { %v846_v19 = vpop.f32.mrf.mxu0  ;;  %2169 = vmatmul.mubr.bf16.gmra.mxu1 %v5102_v0  ;;  %2782 = vmatpush2.bf16.msra.mxu0 %v4237_v10  ;;  %v4240_v10 = vld [vmem:[%s5914_s2 + $0x1d0] sm:$0xff]  }
 0x186   : > { %2783 = vmatprep.subr.bf16.mxu0 %v6036_v62 }
 0x187   : > { %v848_v52 = vpop.f32.mrf.mxu0 }
 0x188   : > { %v5115_v14 = vpack.c.bf16 %v848_v52, %v844_v34 }
 0x189   : > { %v850_v40 = vpop.f32.mrf.mxu0 }
 0x18a   : > { %v5113_v5 = vpack.c.bf16 %v850_v40, %v846_v19 }
 0x18b   : > { %v854_v57 = vpop.f32.mrf.mxu0  ;;  %2362 = vmatmul.mubr.bf16.gmra.mxu0 %v5111_v29 }
 0x18c   : > { %2174 = vmatprep.mubr.bf16.mxu1 %v5113_v5  ;;  %2369 = vmatprep.mubr.bf16.mxu0 %v4990_v60 }
 0x18d   : > { %v856_v44 = vpop.f32.mrf.mxu0  ;;  %2175 = vmatmul.mubr.bf16.gmra.mxu1 %v5115_v14 }
 0x18f   : > { %v858_v39 = vpop.f32.mrf.mxu0 }
 0x190   : > { %v5126_v34 = vpack.c.bf16 %v858_v39, %v854_v57 }
 0x191   : > { %v860_v56 = vpop.f32.mrf.mxu0 }
 0x192   : > { %v5124_v18 = vpack.c.bf16 %v860_v56, %v856_v44  ;;  %6061 = vst [vmem:[#allocation57_spill] sm:$0xff] %v5126_v34  ;;  %v5135_v56 = vpack.c.bf16 %v4840_v54, %v4830_v1  ;;  %v4238_v44 = vld [vmem:[%s5914_s2 + $0x1d8] sm:$0xff]  }
 0x193   : > { %v864_v19 = vpop.f32.mrf.mxu0  ;;  %2370 = vmatmul.mubr.bf16.gmra.mxu0 %v4820_v16 }
 0x194   : > { %6060 = vst [vmem:[#allocation56_spill] sm:$0xff] %v5124_v18  ;;  %2182 = vmatprep.mubr.bf16.mxu1 %v5124_v18  ;;  %2375 = vmatprep.mubr.bf16.mxu0 %v5009_v4  ;;  %6062 = vst [vmem:[#allocation58_spill] sm:$0xff] %v5135_v56  ;;  %v5142_v18 = vpop.f32.mrf.mxu1 }
 0x195   : > { %v866_v52 = vpop.f32.mrf.mxu0  ;;  %2183 = vmatmul.mubr.bf16.gmra.mxu1 %v5126_v34  ;;  %6064 = vst [vmem:[#allocation60_spill] sm:$0xff] %v5142_v18  ;;  %2784 = vmatpush2.bf16.msra.mxu0 %v4238_v44  ;;  %v4241_v44 = vld [vmem:[%s5914_s2 + $0x1c8] sm:$0xff]  }
 0x196   : > { %2785 = vmatprep.subr.bf16.mxu0 %v6036_v62 }
 0x197   : > { %v868_v40 = vpop.f32.mrf.mxu0 }
 0x198   : > { %v5144_v4 = vpack.c.bf16 %v868_v40, %v864_v19 }
 0x199   : > { %v870_v39 = vpop.f32.mrf.mxu0  ;;  %2786 = vmatpush2.bf16.msra.mxu0 %v4240_v10 }
 0x19a   : > { %v5137_v57 = vpack.c.bf16 %v870_v39, %v866_v52  ;;  %6065 = vst [vmem:[#allocation61_spill] sm:$0xff] %v5144_v4  ;;  %2787 = vmatprep.subr.bf16.mxu0 %v6036_v62 }
 0x19b   : > { %v874_v60 = vpop.f32.mrf.mxu0  ;;  %2376 = vmatmul.mubr.bf16.gmra.mxu0 %v5135_v56 }
 0x19c   : > { %6063 = vst [vmem:[#allocation59_spill] sm:$0xff] %v5137_v57  ;;  %2188 = vmatprep.mubr.bf16.mxu1 %v5137_v57  ;;  %2383 = vmatprep.mubr.bf16.mxu0 %v5036_v26 }
 0x19d   : > { %v876_v1 = vpop.f32.mrf.mxu0  ;;  %v5149_v54 = vpop.f32.mrf.mxu1  ;;  %2189 = vmatmul.mubr.bf16.gmra.mxu1 %v5144_v4  ;;  %2788 = vmatpush2.bf16.msra.mxu0 %v4241_v44 }
 0x19e   : > { %6066 = vst [vmem:[#allocation62_spill] sm:$0xff] %v5149_v54  ;;  %2789 = vmatprep.subr.bf16.mxu0 %v6036_v62 }
 0x19f   : > { %v878_v19 = vpop.f32.mrf.mxu0  ;;  %v2024_v52 = vpop.f32.mrf.mxu1 }
 0x1a0   : > { %v5164_v54 = vpack.c.bf16 %v878_v19, %v874_v60  ;;  %v4242_v60 = vld [vmem:[%s5914_s2 + $0x1c0] sm:$0xff]  }
 0x1a1   : > { %v880_v40 = vpop.f32.mrf.mxu0  ;;  %v5156_v39 = vpop.f32.mrf.mxu1  ;;  %2790 = vmatpush2.bf16.msra.mxu0 %v4242_v60 }
 0x1a2   : > { %6067 = vst [vmem:[#allocation63_spill] sm:$0xff] %v5156_v39  ;;  %v5158_v18 = vpack.c.bf16 %v880_v40, %v876_v1 }
 0x1a3   : > { %v884_v26 = vpop.f32.mrf.mxu0  ;;  %v2027_v57 = vpop.f32.mrf.mxu1  ;;  %2384 = vmatmul.mubr.bf16.gmra.mxu0 %v4838_v48 }
 0x1a4   : > { %6068 = vst [vmem:[#allocation64_spill] sm:$0xff] %v5158_v18  ;;  %2196 = vmatprep.mubr.bf16.mxu1 %v5158_v18  ;;  %2389 = vmatprep.mubr.bf16.mxu0 %v5057_v7  ;;  %v5176_v57 = vpack.c.bf16 %v4856_v42, %v4849_v13 }
 0x1a5   : > { %v886_v52 = vpop.f32.mrf.mxu0  ;;  %v2030_v10 = vpop.f32.mrf.mxu1  ;;  %2197 = vmatmul.mubr.bf16.gmra.mxu1 %v5164_v54 }
 0x1a6   : > { %6069 = vst [vmem:[#allocation65_spill] sm:$0xff] %v5176_v57 }
 0x1a7   : > { %v888_v1 = vpop.f32.mrf.mxu0  ;;  %v2031_v19 = vpop.f32.mrf.mxu1 }
 0x1a8   : > { %v5180_v10 = vpack.c.bf16 %v888_v1, %v884_v26 }
 0x1a9   : > { %v890_v40 = vpop.f32.mrf.mxu0  ;;  %v2032_v39 = vpop.f32.mrf.mxu1 }
 0x1aa   : > { %v5178_v7 = vpack.c.bf16 %v890_v40, %v886_v52  ;;  %6070 = vst [vmem:[#allocation66_spill] sm:$0xff] %v5180_v10 }
 0x1ab   : > { %v894_v44 = vpop.f32.mrf.mxu0  ;;  %v2033_v18 = vpop.f32.mrf.mxu1  ;;  %2390 = vmatmul.mubr.bf16.gmra.mxu0 %v5176_v57 }
 0x1ac   : > { %2202 = vmatprep.mubr.bf16.mxu1 %v5178_v7  ;;  %2397 = vmatprep.mubr.bf16.mxu0 %v5078_v63 }
 0x1ad   : > { %v896_v62 = vpop.f32.mrf.mxu0  ;;  %v5185_v19 = vpop.f32.mrf.mxu1  ;;  %2203 = vmatmul.mubr.bf16.gmra.mxu1 %v5180_v10 }
 0x1ae   : > { %6071 = vst [vmem:[#allocation67_spill] sm:$0xff] %v5185_v19 }
 0x1af   : > { %v898_v13 = vpop.f32.mrf.mxu0  ;;  %v2038_v42 = vpop.f32.mrf.mxu1 }
 0x1b0   : > { %v5192_v60 = vpack.c.bf16 %v898_v13, %v894_v44 }
 0x1b1   : > { %v900_v39 = vpop.f32.mrf.mxu0  ;;  %v5188_v52 = vpop.f32.mrf.mxu1 }
 0x1b2   : > { %6072 = vst [vmem:[#allocation68_spill] sm:$0xff] %v5188_v52  ;;  %v5190_v26 = vpack.c.bf16 %v900_v39, %v896_v62  ;;  %6074 = vst [vmem:[#allocation70_spill] sm:$0xff] %v5192_v60  ;;  %v5200_v62 = vpack.c.bf16 %v4881_v32, %v4867_v3 }
 0x1b3   : > { %v904_v18 = vpop.f32.mrf.mxu0  ;;  %v2041_v1 = vpop.f32.mrf.mxu1  ;;  %2398 = vmatmul.mubr.bf16.gmra.mxu0 %v4854_v27 }
 0x1b4   : > { %6073 = vst [vmem:[#allocation69_spill] sm:$0xff] %v5190_v26  ;;  %2210 = vmatprep.mubr.bf16.mxu1 %v5190_v26  ;;  %2403 = vmatprep.mubr.bf16.mxu0 %v5091_v58 }
 0x1b5   : > { %v906_v40 = vpop.f32.mrf.mxu0  ;;  %v2044_v19 = vpop.f32.mrf.mxu1  ;;  %2211 = vmatmul.mubr.bf16.gmra.mxu1 %v5192_v60 }
 0x1b7   : > { %v908_v42 = vpop.f32.mrf.mxu0  ;;  %v2045_v63 = vpop.f32.mrf.mxu1 }
 0x1b8   : > { %v5204_v1 = vpack.c.bf16 %v908_v42, %v904_v18 }
 0x1b9   : > { %v910_v44 = vpop.f32.mrf.mxu0  ;;  %v2046_v13 = vpop.f32.mrf.mxu1 }
 0x1ba   : > { %v5202_v39 = vpack.c.bf16 %v910_v44, %v906_v40  ;;  %6076 = vst [vmem:[#allocation72_spill] sm:$0xff] %v5204_v1 }
 0x1bb   : > { %v914_v52 = vpop.f32.mrf.mxu0  ;;  %v2047_v26 = vpop.f32.mrf.mxu1  ;;  %2404 = vmatmul.mubr.bf16.gmra.mxu0 %v5200_v62 }
 0x1bc   : > { %6075 = vst [vmem:[#allocation71_spill] sm:$0xff] %v5202_v39  ;;  %2216 = vmatprep.mubr.bf16.mxu1 %v5202_v39  ;;  %2411 = vmatprep.mubr.bf16.mxu0 %v5102_v0 }
 0x1bd   : > { %v916_v19 = vpop.f32.mrf.mxu0  ;;  %v5209_v63 = vpop.f32.mrf.mxu1  ;;  %2217 = vmatmul.mubr.bf16.gmra.mxu1 %v5204_v1 }
 0x1be   : > { %6077 = vst [vmem:[#allocation73_spill] sm:$0xff] %v5209_v63 }
 0x1bf   : > { %v918_v3 = vpop.f32.mrf.mxu0  ;;  %v2052_v32 = vpop.f32.mrf.mxu1 }
 0x1c0   : > { %v5216_v42 = vpack.c.bf16 %v918_v3, %v914_v52 }
 0x1c1   : > { %v920_v13 = vpop.f32.mrf.mxu0  ;;  %v5212_v40 = vpop.f32.mrf.mxu1 }
 0x1c2   : > { %6078 = vst [vmem:[#allocation74_spill] sm:$0xff] %v5212_v40  ;;  %v5214_v18 = vpack.c.bf16 %v920_v13, %v916_v19  ;;  %6080 = vst [vmem:[#allocation76_spill] sm:$0xff] %v5216_v42  ;;  %v5224_v19 = vpack.c.bf16 %v4905_v36, %v4894_v9 }
 0x1c3   : > { %v924_v26 = vpop.f32.mrf.mxu0  ;;  %v2055_v44 = vpop.f32.mrf.mxu1  ;;  %2412 = vmatmul.mubr.bf16.gmra.mxu0 %v4878_v17 }
 0x1c4   : > { %6079 = vst [vmem:[#allocation75_spill] sm:$0xff] %v5214_v18  ;;  %2224 = vmatprep.mubr.bf16.mxu1 %v5214_v18  ;;  %2417 = vmatprep.mubr.bf16.mxu0 %v5115_v14 }
 0x1c5   : > { %v926_v63 = vpop.f32.mrf.mxu0  ;;  %v2058_v0 = vpop.f32.mrf.mxu1  ;;  %2225 = vmatmul.mubr.bf16.gmra.mxu1 %v5216_v42 }
 0x1c7   : > { %v928_v32 = vpop.f32.mrf.mxu0  ;;  %v2059_v39 = vpop.f32.mrf.mxu1 }
 0x1c8   : > { %v5228_v44 = vpack.c.bf16 %v928_v32, %v924_v26 }
 0x1c9   : > { %v930_v52 = vpop.f32.mrf.mxu0  ;;  %v2060_v3 = vpop.f32.mrf.mxu1 }
 0x1ca   : > { %v5226_v13 = vpack.c.bf16 %v930_v52, %v926_v63  ;;  %6081 = vst [vmem:[#allocation77_spill] sm:$0xff] %v5228_v44 }
 0x1cb   : > { %v934_v40 = vpop.f32.mrf.mxu0  ;;  %v2061_v18 = vpop.f32.mrf.mxu1  ;;  %2418 = vmatmul.mubr.bf16.gmra.mxu0 %v5224_v19 }
 0x1cc   : > { %2230 = vmatprep.mubr.bf16.mxu1 %v5226_v13  ;;  %2425 = vmatprep.mubr.bf16.mxu0 %v5126_v34 }
 0x1cd   : > { %v936_v0 = vpop.f32.mrf.mxu0  ;;  %v5233_v39 = vpop.f32.mrf.mxu1  ;;  %2231 = vmatmul.mubr.bf16.gmra.mxu1 %v5228_v44 }
 0x1ce   : > { %6082 = vst [vmem:[#allocation78_spill] sm:$0xff] %v5233_v39 }
 0x1cf   : > { %v938_v9 = vpop.f32.mrf.mxu0  ;;  %v2066_v36 = vpop.f32.mrf.mxu1 }
 0x1d0   : > { %v5240_v32 = vpack.c.bf16 %v938_v9, %v934_v40  ;;  %v5253_v40 = vpack.c.bf16 %v4934_v46, %v4920_v11  ;;  %v4239_v46 = vld [vmem:[%s5914_s2 + $0x228] sm:$0xff]  }
 0x1d1   : > { %v940_v3 = vpop.f32.mrf.mxu0  ;;  %v5236_v63 = vpop.f32.mrf.mxu1 }
 0x1d2   : > { %6083 = vst [vmem:[#allocation79_spill] sm:$0xff] %v5236_v63  ;;  %v5238_v26 = vpack.c.bf16 %v940_v3, %v936_v0  ;;  %6084 = vst [vmem:[#allocation80_spill] sm:$0xff] %v5240_v32 }
 0x1d3   : > { %v5242_v18 = vpop.f32.mrf.mxu0  ;;  %v2069_v52 = vpop.f32.mrf.mxu1  ;;  %2426 = vmatmul.mubr.bf16.gmra.mxu0 %v4902_v38 }
 0x1d4   : > { %2238 = vmatprep.mubr.bf16.mxu1 %v5238_v26  ;;  %2431 = vmatprep.mubr.bf16.mxu0 %v5144_v4 }
 0x1d5   : > { %v946_v39 = vpop.f32.mrf.mxu0  ;;  %v2072_v34 = vpop.f32.mrf.mxu1  ;;  %2239 = vmatmul.mubr.bf16.gmra.mxu1 %v5240_v32 }
 0x1d6   : > { %2534 = vmatprep.mubr.bf16.mxu1 %v4909_v55  ;;  %v4235_v55 = vld [vmem:[%s5914_s2 + $0x230] sm:$0xff]  }
 0x1d7   : > { %v5249_v36 = vpop.f32.mrf.mxu0  ;;  %v2073_v0 = vpop.f32.mrf.mxu1 }
 0x1d9   : > { %v950_v9 = vpop.f32.mrf.mxu0  ;;  %v2074_v3 = vpop.f32.mrf.mxu1 }
 0x1da   : > { %v5255_v52 = vpack.c.bf16 %v950_v9, %v946_v39 }
 0x1db   : > { %v5257_v63 = vpop.f32.mrf.mxu0  ;;  %v2075_v4 = vpop.f32.mrf.mxu1  ;;  %2432 = vmatmul.mubr.bf16.gmra.mxu0 %v5253_v40 }
 0x1dc   : > { %2439 = vmatprep.mubr.bf16.mxu0 %v5164_v54 }
 0x1dd   : > { %v956_v34 = vpop.f32.mrf.mxu0  ;;  %v5264_v0 = vpop.f32.mrf.mxu1  ;;  %2535 = vmatmul.mubr.bf16.vlgmr.msra.gmra.mxu1 %v4695_v41 }
 0x1de   : > { %6085 = vst [vmem:[#allocation81_spill] sm:$0xff] %v5264_v0  ;;  %4028 = vmatpush3.bf16.msra.mxu1 %v5019_v12  ;;  %2542 = vmatprep.mubr.bf16.mxu1 %v4939_v15  ;;  %v4243_v15 = vld [vmem:[%s5914_s2 + $0x220] sm:$0xff]  }
 0x1df   : > { %v5269_v11 = vpop.f32.mrf.mxu0  ;;  %v2080_v4 = vpop.f32.mrf.mxu1  ;;  %4029 = vmatprep.subr.bf16.mxu1 %v4235_v55 }
 0x1e1   : > { %v960_v39 = vpop.f32.mrf.mxu0  ;;  %v5274_v9 = vpop.f32.mrf.mxu1 }
 0x1e2   : > { %6086 = vst [vmem:[#allocation82_spill] sm:$0xff] %v5274_v9  ;;  %v5276_v3 = vpack.c.bf16 %v960_v39, %v956_v34  ;;  %4030 = vmatpush3.bf16.msra.mxu1 %v4235_v55  ;;  %v4244_v39 = vld [vmem:[%s5914_s2 + $0x218] sm:$0xff]   ;;  %v5298_v9 = vpack.c.bf16 %v4958_v45, %v4950_v6 }
 0x1e3   : > { %v5278_v0 = vpop.f32.mrf.mxu0  ;;  %v2083_v41 = vpop.f32.mrf.mxu1  ;;  %2440 = vmatmul.mubr.bf16.gmra.mxu0 %v4931_v23  ;;  %4031 = vmatprep.subr.bf16.mxu1 %v4239_v46 }
 0x1e4   : > { %6087 = vst [vmem:[#allocation83_spill] sm:$0xff] %v5278_v0  ;;  %2445 = vmatprep.mubr.bf16.mxu0 %v5180_v10 }
 0x1e5   : > { %v5285_v12 = vpop.f32.mrf.mxu0  ;;  %v2086_v4 = vpop.f32.mrf.mxu1  ;;  %2543 = vmatmul.mubr.bf16.gmra.mxu1 %v4720_v53 }
 0x1e6   : > { %6088 = vst [vmem:[#allocation84_spill] sm:$0xff] %v5285_v12  ;;  %2548 = vmatprep.mubr.bf16.mxu1 %v4962_v28  ;;  %4032 = vmatpush3.bf16.msra.mxu1 %v4239_v46 }
 0x1e7   : > { %v5289_v55 = vpop.f32.mrf.mxu0  ;;  %v2087_v34 = vpop.f32.mrf.mxu1  ;;  %4033 = vmatprep.subr.bf16.mxu1 %v4243_v15 }
 0x1e8   : > { %6089 = vst [vmem:[#allocation85_spill] sm:$0xff] %v5289_v55 }
 0x1e9   : > { %v5300_v4 = vpop.f32.mrf.mxu0  ;;  %v2088_v53 = vpop.f32.mrf.mxu1 }
 0x1ea   : > { %6090 = vst [vmem:[#allocation86_spill] sm:$0xff] %v5300_v4  ;;  %4034 = vmatpush3.bf16.msra.mxu1 %v4243_v15 }
 0x1eb   : > { %v2089_v34 = vpop.f32.mrf.mxu1  ;;  %v5304_v10 = vpop.f32.mrf.mxu0  ;;  %2446 = vmatmul.mubr.bf16.gmra.mxu0 %v5298_v9  ;;  %4035 = vmatprep.subr.bf16.mxu1 %v4244_v39 }
 0x1ec   : > { %2453 = vmatprep.mubr.bf16.mxu0 %v5192_v60 }
 0x1ed   : > { %v5308_v41 = vpop.f32.mrf.mxu1  ;;  %v2281_v0 = vpop.f32.mrf.mxu0  ;;  %2549 = vmatmul.mubr.bf16.gmra.mxu1 %v4745_v8 }
 0x1ee   : > { %6091 = vst [vmem:[#allocation87_spill] sm:$0xff] %v5308_v41  ;;  %2556 = vmatprep.mubr.bf16.mxu1 %v4983_v35  ;;  %4036 = vmatpush3.bf16.msra.mxu1 %v4244_v39  ;;  %v6097_v41 = vld [vmem:[#allocation11_spill] sm:$0xff] }
 0x1ef   : > { %v2094_v6 = vpop.f32.mrf.mxu1  ;;  %v5312_v45 = vpop.f32.mrf.mxu0 }
 0x1f0   : > { %v5322_v6 = vpack.c.bf16 %v4979_v47, %v4969_v20 }
 0x1f1   : > { %v5314_v15 = vpop.f32.mrf.mxu1  ;;  %v2284_v53 = vpop.f32.mrf.mxu0 }
 0x1f2   : > { %6092 = vst [vmem:[#allocation88_spill] sm:$0xff] %v5314_v15  ;;  %v6096_v15 = vld [vmem:[#allocation27_spill] sm:$0xff] }
 0x1f3   : > { %v2097_v34 = vpop.f32.mrf.mxu1  ;;  %v2287_v46 = vpop.f32.mrf.mxu0  ;;  %2454 = vmatmul.mubr.bf16.gmra.mxu0 %v4955_v25 }
 0x1f4   : > { %2459 = vmatprep.mubr.bf16.mxu0 %v5204_v1 }
 0x1f5   : > { %v2100_v55 = vpop.f32.mrf.mxu1  ;;  %v2288_v12 = vpop.f32.mrf.mxu0  ;;  %2557 = vmatmul.mubr.bf16.gmra.mxu1 %v4770_v21 }
 0x1f6   : > { %2562 = vmatprep.mubr.bf16.mxu1 %v5005_v24  ;;  %v4245_v12 = vld [vmem:[%s5914_s2 + $0x210] sm:$0xff]  }
 0x1f7   : > { %v2101_v0 = vpop.f32.mrf.mxu1  ;;  %v2289_v39 = vpop.f32.mrf.mxu0  ;;  %4037 = vmatprep.subr.bf16.mxu1 %v4245_v12 }
 0x1f8   : > { %v6094_v39 = vld [vmem:[#allocation8_spill] sm:$0xff]  ;;  %4038 = vmatpush3.bf16.msra.mxu1 %v4245_v12 }
 0x1f9   : > { %v2102_v4 = vpop.f32.mrf.mxu1  ;;  %v2290_v53 = vpop.f32.mrf.mxu0 }
 0x1fb   : > { %v2103_v34 = vpop.f32.mrf.mxu1  ;;  %v5324_v46 = vpop.f32.mrf.mxu0  ;;  %2460 = vmatmul.mubr.bf16.gmra.mxu0 %v5322_v6 }
 0x1fc   : > { %2467 = vmatprep.mubr.bf16.mxu0 %v5216_v42 }
 0x1fd   : > { %v5331_v55 = vpop.f32.mrf.mxu1  ;;  %v2295_v0 = vpop.f32.mrf.mxu0  ;;  %2563 = vmatmul.mubr.bf16.gmra.mxu1 %v6094_v39 }
 0x1fe   : > { %6093 = vst [vmem:[#allocation89_spill] sm:$0xff] %v5331_v55  ;;  %2570 = vmatprep.mubr.bf16.mxu1 %v5029_v59  ;;  %v6098_v59 = vld [vmem:[#allocation31_spill] sm:$0xff] }
 0x1ff   : > { %v2108_v20 = vpop.f32.mrf.mxu1  ;;  %v5335_v47 = vpop.f32.mrf.mxu0  ;;  %v5345_v12 = vpack.c.bf16 %v5001_v22, %v6098_v59 }
 0x201   : > { %v5337_v4 = vpop.f32.mrf.mxu1  ;;  %v2298_v53 = vpop.f32.mrf.mxu0 }
 0x202   : > { %6095 = vst [vmem:[#allocation8_spill] sm:$0xff] %v5337_v4 }
 0x203   : > { %v2111_v34 = vpop.f32.mrf.mxu1  ;;  %v2301_v42 = vpop.f32.mrf.mxu0  ;;  %2468 = vmatmul.mubr.bf16.gmra.mxu0 %v6096_v15 }
 0x204   : > { %2473 = vmatprep.mubr.bf16.mxu0 %v5228_v44  ;;  %v6100_v44 = vld [vmem:[#allocation14_spill] sm:$0xff] }
 0x205   : > { %v2114_v55 = vpop.f32.mrf.mxu1  ;;  %v2302_v0 = vpop.f32.mrf.mxu0  ;;  %2571 = vmatmul.mubr.bf16.gmra.mxu1 %v6097_v41 }
 0x206   : > { %2576 = vmatprep.mubr.bf16.mxu1 %v5051_v30  ;;  %v6104_v30 = vld [vmem:[#allocation17_spill] sm:$0xff] }
 0x207   : > { %v2115_v1 = vpop.f32.mrf.mxu1  ;;  %v2303_v20 = vpop.f32.mrf.mxu0 }
 0x209   : > { %v2116_v4 = vpop.f32.mrf.mxu1  ;;  %v2304_v53 = vpop.f32.mrf.mxu0 }
 0x20a   : > { %v5361_v4 = vpack.c.bf16 %v5249_v36, %v5242_v18 }
 0x20b   : > { %v2117_v34 = vpop.f32.mrf.mxu1  ;;  %v5347_v42 = vpop.f32.mrf.mxu0  ;;  %2474 = vmatmul.mubr.bf16.gmra.mxu0 %v5345_v12 }
 0x20c   : > { %2481 = vmatprep.mubr.bf16.mxu0 %v5240_v32  ;;  %6102 = vst [vmem:[#allocation31_spill] sm:$0xff] %v5361_v4  ;;  %v6103_v32 = vld [vmem:[#allocation32_spill] sm:$0xff] }
 0x20d   : > { %v5351_v55 = vpop.f32.mrf.mxu1  ;;  %v2309_v0 = vpop.f32.mrf.mxu0  ;;  %2577 = vmatmul.mubr.bf16.gmra.mxu1 %v6100_v44 }
 0x20e   : > { %6099 = vst [vmem:[#allocation27_spill] sm:$0xff] %v5351_v55  ;;  %2584 = vmatprep.mubr.bf16.mxu1 %v5071_v61 }
 0x20f   : > { %v2122_v1 = vpop.f32.mrf.mxu1  ;;  %v5355_v20 = vpop.f32.mrf.mxu0 }
 0x211   : > { %v5357_v22 = vpop.f32.mrf.mxu1  ;;  %v2312_v59 = vpop.f32.mrf.mxu0 }
 0x212   : > { %6101 = vst [vmem:[#allocation11_spill] sm:$0xff] %v5357_v22  ;;  %v6105_v22 = vld [vmem:[#allocation36_spill] sm:$0xff]  ;;  %v6106_v59 = vld [vmem:[#allocation38_spill] sm:$0xff] }
 0x213   : > { %v2125_v53 = vpop.f32.mrf.mxu1  ;;  %v2315_v34 = vpop.f32.mrf.mxu0  ;;  %2482 = vmatmul.mubr.bf16.gmra.mxu0 %v6103_v32  ;;  %v5369_v60 = vpack.c.bf16 %v6106_v59, %v6105_v22 }
 0x214   : > { %2487 = vmatprep.mubr.bf16.mxu0 %v5361_v4  ;;  %v5373_v53 = vpack.c.bf16 %v5269_v11, %v5257_v63 }
 0x215   : > { %v2128_v0 = vpop.f32.mrf.mxu1  ;;  %v2316_v55 = vpop.f32.mrf.mxu0  ;;  %2585 = vmatmul.mubr.bf16.gmra.mxu1 %v6104_v30 }
 0x216   : > { %2590 = vmatprep.mubr.bf16.mxu1 %v5087_v31  ;;  %6107 = vst [vmem:[#allocation14_spill] sm:$0xff] %v5373_v53  ;;  %v6109_v0 = vld [vmem:[#allocation20_spill] sm:$0xff] }
 0x217   : > { %v2129_v1 = vpop.f32.mrf.mxu1  ;;  %v2317_v61 = vpop.f32.mrf.mxu0 }
 0x218   : > { %v4246_v61 = vld [vmem:[%s5914_s2 + $0x208] sm:$0xff]  }
 0x219   : > { %v2130_v18 = vpop.f32.mrf.mxu1  ;;  %v2318_v36 = vpop.f32.mrf.mxu0  ;;  %4039 = vmatprep.subr.bf16.mxu1 %v4246_v61 }
 0x21a   : > { %4040 = vmatpush3.bf16.msra.mxu1 %v4246_v61 }
 0x21b   : > { %v2131_v34 = vpop.f32.mrf.mxu1  ;;  %v5375_v4 = vpop.f32.mrf.mxu0  ;;  %2488 = vmatmul.mubr.bf16.gmra.mxu0 %v5369_v60 }
 0x21c   : > { %2495 = vmatprep.mubr.bf16.mxu0 %v5373_v53  ;;  %v6111_v34 = vld [vmem:[#allocation37_spill] sm:$0xff]  ;;  %v6112_v53 = vld [vmem:[#allocation22_spill] sm:$0xff] }
 0x21d   : > { %v5382_v55 = vpop.f32.mrf.mxu1  ;;  %v2323_v22 = vpop.f32.mrf.mxu0  ;;  %2591 = vmatmul.mubr.bf16.gmra.mxu1 %v6109_v0 }
 0x21e   : > { %6108 = vst [vmem:[#allocation32_spill] sm:$0xff] %v5382_v55  ;;  %2598 = vmatprep.mubr.bf16.mxu1 %v4804_v51 }
 0x21f   : > { %v2136_v63 = vpop.f32.mrf.mxu1  ;;  %v5386_v11 = vpop.f32.mrf.mxu0 }
 0x221   : > { %v5388_v1 = vpop.f32.mrf.mxu1  ;;  %v2326_v59 = vpop.f32.mrf.mxu0 }
 0x222   : > { %6110 = vst [vmem:[#allocation17_spill] sm:$0xff] %v5388_v1  ;;  %v6113_v59 = vld [vmem:[#allocation6_spill] sm:$0xff] }
 0x223   : > { %v2139_v18 = vpop.f32.mrf.mxu1  ;;  %v2329_v36 = vpop.f32.mrf.mxu0  ;;  %2496 = vmatmul.mubr.bf16.gmra.mxu0 %v6111_v34 }
 0x224   : > { %2791 = vmatprep.mubr.bf16.mxu0 %v4745_v8 }
 0x225   : > { %v2142_v55 = vpop.f32.mrf.mxu1  ;;  %v2330_v22 = vpop.f32.mrf.mxu0  ;;  %2599 = vmatmul.mubr.bf16.gmra.mxu1 %v6112_v53 }
 0x226   : > { %2604 = vmatprep.mubr.bf16.mxu1 %v5111_v29  ;;  %v6115_v55 = vld [vmem:[#allocation23_spill] sm:$0xff] }
 0x227   : > { %v2143_v51 = vpop.f32.mrf.mxu1  ;;  %v2331_v63 = vpop.f32.mrf.mxu0 }
 0x229   : > { %v2144_v31 = vpop.f32.mrf.mxu1  ;;  %v2332_v24 = vpop.f32.mrf.mxu0 }
 0x22b   : > { %v2145_v61 = vpop.f32.mrf.mxu1  ;;  %v5394_v35 = vpop.f32.mrf.mxu0  ;;  %2792 = vmatmul.mubr.bf16.vlgmr.msra.gmra.mxu0 %v6113_v59 }
 0x22c   : > { %2799 = vmatprep.mubr.bf16.mxu0 %v4770_v21  ;;  %v6118_v61 = vld [vmem:[#allocation7_spill] sm:$0xff] }
 0x22d   : > { %v5398_v18 = vpop.f32.mrf.mxu1  ;;  %v2337_v8 = vpop.f32.mrf.mxu0  ;;  %2605 = vmatmul.mubr.bf16.gmra.mxu1 %v6115_v55 }
 0x22e   : > { %6114 = vst [vmem:[#allocation36_spill] sm:$0xff] %v5398_v18  ;;  %2612 = vmatprep.mubr.bf16.mxu1 %v4820_v16  ;;  %v6119_v18 = vld [vmem:[#allocation24_spill] sm:$0xff] }
 0x22f   : > { %v2150_v36 = vpop.f32.mrf.mxu1  ;;  %v5402_v22 = vpop.f32.mrf.mxu0 }
 0x230   : > { %6116 = vst [vmem:[#allocation38_spill] sm:$0xff] %v5402_v22 }
 0x231   : > { %v5404_v51 = vpop.f32.mrf.mxu1  ;;  %v2340_v24 = vpop.f32.mrf.mxu0 }
 0x232   : > { %6117 = vst [vmem:[#allocation20_spill] sm:$0xff] %v5404_v51  ;;  %v6120_v24 = vld [vmem:[#allocation9_spill] sm:$0xff] }
 0x233   : > { %v2153_v31 = vpop.f32.mrf.mxu1  ;;  %v2343_v63 = vpop.f32.mrf.mxu0  ;;  %2800 = vmatmul.mubr.bf16.gmra.mxu0 %v6118_v61  ;;  %v6122_v61 = vld [vmem:[#allocation25_spill] sm:$0xff] }
 0x234   : > { %2805 = vmatprep.mubr.bf16.mxu0 %v6094_v39  ;;  %v4247_v39 = vld [vmem:[%s5914_s2 + $0x200] sm:$0xff]  }
 0x235   : > { %v2156_v21 = vpop.f32.mrf.mxu1  ;;  %v2344_v59 = vpop.f32.mrf.mxu0  ;;  %2613 = vmatmul.mubr.bf16.gmra.mxu1 %v6119_v18  ;;  %4041 = vmatprep.subr.bf16.mxu1 %v4247_v39 }
 0x236   : > { %2618 = vmatprep.mubr.bf16.mxu1 %v5135_v56  ;;  %4042 = vmatpush3.bf16.msra.mxu1 %v4247_v39 }
 0x237   : > { %v2157_v8 = vpop.f32.mrf.mxu1  ;;  %v2345_v1 = vpop.f32.mrf.mxu0 }
 0x238   : > { %v6124_v8 = vld [vmem:[#allocation12_spill] sm:$0xff] }
 0x239   : > { %v2158_v36 = vpop.f32.mrf.mxu1  ;;  %v2346_v16 = vpop.f32.mrf.mxu0 }
 0x23b   : > { %v2159_v29 = vpop.f32.mrf.mxu1  ;;  %v5410_v22 = vpop.f32.mrf.mxu0  ;;  %2806 = vmatmul.mubr.bf16.gmra.mxu0 %v6120_v24 }
 0x23c   : > { %2813 = vmatprep.mubr.bf16.mxu0 %v6097_v41 }
 0x23d   : > { %v5417_v31 = vpop.f32.mrf.mxu1  ;;  %v2351_v63 = vpop.f32.mrf.mxu0  ;;  %2619 = vmatmul.mubr.bf16.gmra.mxu1 %v6122_v61 }
 0x23e   : > { %6121 = vst [vmem:[#allocation37_spill] sm:$0xff] %v5417_v31  ;;  %2626 = vmatprep.mubr.bf16.mxu1 %v4838_v48  ;;  %v6125_v63 = vld [vmem:[#allocation29_spill] sm:$0xff] }
 0x23f   : > { %v2164_v16 = vpop.f32.mrf.mxu1  ;;  %v5421_v29 = vpop.f32.mrf.mxu0 }
 0x241   : > { %v5423_v1 = vpop.f32.mrf.mxu1  ;;  %v2354_v21 = vpop.f32.mrf.mxu0 }
 0x242   : > { %6123 = vst [vmem:[#allocation22_spill] sm:$0xff] %v5423_v1  ;;  %v6126_v21 = vld [vmem:[#allocation15_spill] sm:$0xff] }
 0x243   : > { %v2167_v41 = vpop.f32.mrf.mxu1  ;;  %v2357_v59 = vpop.f32.mrf.mxu0  ;;  %2814 = vmatmul.mubr.bf16.gmra.mxu0 %v6124_v8 }
 0x244   : > { %2819 = vmatprep.mubr.bf16.mxu0 %v6100_v44  ;;  %v6128_v59 = vld [vmem:[#allocation34_spill] sm:$0xff] }
 0x245   : > { %v2170_v36 = vpop.f32.mrf.mxu1  ;;  %v2358_v24 = vpop.f32.mrf.mxu0  ;;  %2627 = vmatmul.mubr.bf16.gmra.mxu1 %v6125_v63 }
 0x246   : > { %2632 = vmatprep.mubr.bf16.mxu1 %v5176_v57 }
 0x247   : > { %v2171_v31 = vpop.f32.mrf.mxu1  ;;  %v2359_v16 = vpop.f32.mrf.mxu0 }
 0x248   : > { %v6130_v16 = vld [vmem:[#allocation18_spill] sm:$0xff] }
 0x249   : > { %v2172_v51 = vpop.f32.mrf.mxu1  ;;  %v2360_v48 = vpop.f32.mrf.mxu0 }
 0x24b   : > { %v2173_v39 = vpop.f32.mrf.mxu1  ;;  %v5429_v56 = vpop.f32.mrf.mxu0  ;;  %2820 = vmatmul.mubr.bf16.gmra.mxu0 %v6126_v21  ;;  %v6131_v21 = vld [vmem:[#allocation40_spill] sm:$0xff] }
 0x24c   : > { %2827 = vmatprep.mubr.bf16.mxu0 %v6104_v30 }
 0x24d   : > { %v5433_v41 = vpop.f32.mrf.mxu1  ;;  %v2365_v44 = vpop.f32.mrf.mxu0  ;;  %2633 = vmatmul.mubr.bf16.gmra.mxu1 %v6128_v59 }
 0x24e   : > { %6127 = vst [vmem:[#allocation6_spill] sm:$0xff] %v5433_v41  ;;  %2640 = vmatprep.mubr.bf16.mxu1 %v4854_v27 }
 0x24f   : > { %v2178_v8 = vpop.f32.mrf.mxu1  ;;  %v5437_v36 = vpop.f32.mrf.mxu0 }
 0x251   : > { %v5439_v31 = vpop.f32.mrf.mxu1  ;;  %v2368_v48 = vpop.f32.mrf.mxu0 }
 0x252   : > { %6129 = vst [vmem:[#allocation23_spill] sm:$0xff] %v5439_v31  ;;  %v6132_v48 = vld [vmem:[#allocation21_spill] sm:$0xff] }
 0x253   : > { %v2181_v51 = vpop.f32.mrf.mxu1  ;;  %v2371_v24 = vpop.f32.mrf.mxu0  ;;  %2828 = vmatmul.mubr.bf16.gmra.mxu0 %v6130_v16 }
 0x254   : > { %2833 = vmatprep.mubr.bf16.mxu0 %v6109_v0 }
 0x255   : > { %v2184_v30 = vpop.f32.mrf.mxu1  ;;  %v2372_v39 = vpop.f32.mrf.mxu0  ;;  %2641 = vmatmul.mubr.bf16.gmra.mxu1 %v6131_v21 }
 0x256   : > { %2646 = vmatprep.mubr.bf16.mxu1 %v5200_v62 }
 0x257   : > { %v2185_v44 = vpop.f32.mrf.mxu1  ;;  %v2373_v41 = vpop.f32.mrf.mxu0 }
 0x259   : > { %v2186_v8 = vpop.f32.mrf.mxu1  ;;  %v2374_v1 = vpop.f32.mrf.mxu0 }
 0x25b   : > { %v2187_v27 = vpop.f32.mrf.mxu1  ;;  %v5445_v57 = vpop.f32.mrf.mxu0  ;;  %2834 = vmatmul.mubr.bf16.gmra.mxu0 %v6132_v48 }
 0x25c   : > { %2841 = vmatprep.mubr.bf16.mxu0 %v6112_v53 }
 0x25d   : > { %v5449_v51 = vpop.f32.mrf.mxu1  ;;  %v2379_v0 = vpop.f32.mrf.mxu0  ;;  %2647 = vmatmul.mubr.bf16.gmra.mxu1 %v5055_v43 }
 0x25e   : > { %6133 = vst [vmem:[#allocation7_spill] sm:$0xff] %v5449_v51  ;;  %2654 = vmatprep.mubr.bf16.mxu1 %v4878_v17 }
 0x25f   : > { %v2192_v24 = vpop.f32.mrf.mxu1  ;;  %v5453_v16 = vpop.f32.mrf.mxu0 }
 0x261   : > { %v5455_v41 = vpop.f32.mrf.mxu1  ;;  %v2382_v1 = vpop.f32.mrf.mxu0 }
 0x262   : > { %6134 = vst [vmem:[#allocation24_spill] sm:$0xff] %v5455_v41 }
 0x263   : > { %v2195_v27 = vpop.f32.mrf.mxu1  ;;  %v2385_v30 = vpop.f32.mrf.mxu0  ;;  %2842 = vmatmul.mubr.bf16.gmra.mxu0 %v4892_v33 }
 0x264   : > { %2847 = vmatprep.mubr.bf16.mxu0 %v6115_v55 }
 0x265   : > { %v2198_v53 = vpop.f32.mrf.mxu1  ;;  %v2386_v39 = vpop.f32.mrf.mxu0  ;;  %2655 = vmatmul.mubr.bf16.gmra.mxu1 %v5076_v37 }
 0x266   : > { %2660 = vmatprep.mubr.bf16.mxu1 %v5224_v19 }
 0x267   : > { %v2199_v44 = vpop.f32.mrf.mxu1  ;;  %v2387_v8 = vpop.f32.mrf.mxu0 }
 0x268   : > { %v6137_v8 = vld [vmem:[#allocation53_spill] sm:$0xff] }
 0x269   : > { %v2200_v48 = vpop.f32.mrf.mxu1  ;;  %v2388_v0 = vpop.f32.mrf.mxu0 }
 0x26b   : > { %v2201_v24 = vpop.f32.mrf.mxu1  ;;  %v5461_v51 = vpop.f32.mrf.mxu0  ;;  %2848 = vmatmul.mubr.bf16.gmra.mxu0 %v4917_v49 }
 0x26c   : > { %2855 = vmatprep.mubr.bf16.mxu0 %v6119_v18 }
 0x26d   : > { %v5465_v33 = vpop.f32.mrf.mxu1  ;;  %v2393_v55 = vpop.f32.mrf.mxu0  ;;  %2661 = vmatmul.mubr.bf16.gmra.mxu1 %v5089_v2 }
 0x26e   : > { %6135 = vst [vmem:[#allocation9_spill] sm:$0xff] %v5465_v33  ;;  %2668 = vmatprep.mubr.bf16.mxu1 %v4902_v38 }
 0x26f   : > { %v2206_v1 = vpop.f32.mrf.mxu1  ;;  %v5469_v27 = vpop.f32.mrf.mxu0 }
 0x271   : > { %v5471_v30 = vpop.f32.mrf.mxu1  ;;  %v2396_v53 = vpop.f32.mrf.mxu0 }
 0x272   : > { %6136 = vst [vmem:[#allocation25_spill] sm:$0xff] %v5471_v30  ;;  %v6138_v53 = vld [vmem:[#allocation26_spill] sm:$0xff] }
 0x273   : > { %v2209_v39 = vpop.f32.mrf.mxu1  ;;  %v2399_v44 = vpop.f32.mrf.mxu0  ;;  %2856 = vmatmul.mubr.bf16.gmra.mxu0 %v4947_v50 }
 0x274   : > { %2861 = vmatprep.mubr.bf16.mxu0 %v6122_v61 }
 0x275   : > { %v2212_v49 = vpop.f32.mrf.mxu1  ;;  %v2400_v18 = vpop.f32.mrf.mxu0  ;;  %2669 = vmatmul.mubr.bf16.gmra.mxu1 %v6137_v8 }
 0x276   : > { %2674 = vmatprep.mubr.bf16.mxu1 %v5253_v40 }
 0x277   : > { %v2213_v48 = vpop.f32.mrf.mxu1  ;;  %v2401_v0 = vpop.f32.mrf.mxu0 }
 0x279   : > { %v2214_v24 = vpop.f32.mrf.mxu1  ;;  %v2402_v55 = vpop.f32.mrf.mxu0 }
 0x27a   : > { %v6141_v24 = vld [vmem:[#allocation30_spill] sm:$0xff] }
 0x27b   : > { %v2215_v1 = vpop.f32.mrf.mxu1  ;;  %v5477_v33 = vpop.f32.mrf.mxu0  ;;  %2862 = vmatmul.mubr.bf16.gmra.mxu0 %v6138_v53 }
 0x27c   : > { %2869 = vmatprep.mubr.bf16.mxu0 %v6125_v63  ;;  %v6142_v1 = vld [vmem:[#allocation56_spill] sm:$0xff] }
 0x27d   : > { %v5481_v50 = vpop.f32.mrf.mxu1  ;;  %v2407_v61 = vpop.f32.mrf.mxu0  ;;  %2675 = vmatmul.mubr.bf16.gmra.mxu1 %v5113_v5 }
 0x27e   : > { %6139 = vst [vmem:[#allocation12_spill] sm:$0xff] %v5481_v50  ;;  %2682 = vmatprep.mubr.bf16.mxu1 %v4931_v23 }
 0x27f   : > { %v2220_v39 = vpop.f32.mrf.mxu1  ;;  %v5485_v44 = vpop.f32.mrf.mxu0 }
 0x281   : > { %v5487_v49 = vpop.f32.mrf.mxu1  ;;  %v2410_v18 = vpop.f32.mrf.mxu0 }
 0x282   : > { %6140 = vst [vmem:[#allocation29_spill] sm:$0xff] %v5487_v49  ;;  %v6143_v18 = vld [vmem:[#allocation35_spill] sm:$0xff] }
 0x283   : > { %v2223_v48 = vpop.f32.mrf.mxu1  ;;  %v2413_v0 = vpop.f32.mrf.mxu0  ;;  %2870 = vmatmul.mubr.bf16.gmra.mxu0 %v6141_v24 }
 0x284   : > { %2875 = vmatprep.mubr.bf16.mxu0 %v6128_v59  ;;  %v6145_v0 = vld [vmem:[#allocation59_spill] sm:$0xff] }
 0x285   : > { %v2226_v63 = vpop.f32.mrf.mxu1  ;;  %v2414_v55 = vpop.f32.mrf.mxu0  ;;  %2683 = vmatmul.mubr.bf16.gmra.mxu1 %v6142_v1 }
 0x286   : > { %2688 = vmatprep.mubr.bf16.mxu1 %v5298_v9 }
 0x287   : > { %v2227_v53 = vpop.f32.mrf.mxu1  ;;  %v2415_v61 = vpop.f32.mrf.mxu0 }
 0x288   : > { %v6148_v61 = vld [vmem:[#allocation41_spill] sm:$0xff] }
 0x289   : > { %v2228_v39 = vpop.f32.mrf.mxu1  ;;  %v2416_v50 = vpop.f32.mrf.mxu0 }
 0x28b   : > { %v2229_v30 = vpop.f32.mrf.mxu1  ;;  %v5493_v41 = vpop.f32.mrf.mxu0  ;;  %2876 = vmatmul.mubr.bf16.gmra.mxu0 %v6143_v18  ;;  %v6149_v18 = vld [vmem:[#allocation64_spill] sm:$0xff] }
 0x28c   : > { %2883 = vmatprep.mubr.bf16.mxu0 %v6131_v21 }
 0x28d   : > { %v5497_v48 = vpop.f32.mrf.mxu1  ;;  %v2421_v59 = vpop.f32.mrf.mxu0  ;;  %2689 = vmatmul.mubr.bf16.gmra.mxu1 %v6145_v0 }
 0x28e   : > { %6144 = vst [vmem:[#allocation15_spill] sm:$0xff] %v5497_v48  ;;  %2696 = vmatprep.mubr.bf16.mxu1 %v4955_v25 }
 0x28f   : > { %v2234_v24 = vpop.f32.mrf.mxu1  ;;  %v5501_v63 = vpop.f32.mrf.mxu0 }
 0x290   : > { %6146 = vst [vmem:[#allocation34_spill] sm:$0xff] %v5501_v63 }
 0x291   : > { %v5503_v55 = vpop.f32.mrf.mxu1  ;;  %v2424_v50 = vpop.f32.mrf.mxu0 }
 0x292   : > { %6147 = vst [vmem:[#allocation18_spill] sm:$0xff] %v5503_v55  ;;  %v6150_v50 = vld [vmem:[#allocation47_spill] sm:$0xff] }
 0x293   : > { %v2237_v30 = vpop.f32.mrf.mxu1  ;;  %v2427_v53 = vpop.f32.mrf.mxu0  ;;  %2884 = vmatmul.mubr.bf16.gmra.mxu0 %v6148_v61 }
 0x294   : > { %2889 = vmatprep.mubr.bf16.mxu0 %v5055_v43  ;;  %v6151_v30 = vld [vmem:[#allocation62_spill] sm:$0xff] }
 0x295   : > { %v2240_v21 = vpop.f32.mrf.mxu1  ;;  %v2428_v39 = vpop.f32.mrf.mxu0  ;;  %2697 = vmatmul.mubr.bf16.gmra.mxu1 %v6149_v18  ;;  %v2280_v53 = vadd.f32 %v5304_v10, %v6151_v30  ;;  %v6154_v30 = vld [vmem:[#allocation51_spill] sm:$0xff] }
 0x296   : > { %2702 = vmatprep.mubr.bf16.mxu1 %v5322_v6 }
 0x297   : > { %v2241_v59 = vpop.f32.mrf.mxu1  ;;  %v2429_v48 = vpop.f32.mrf.mxu0 }
 0x299   : > { %v2242_v24 = vpop.f32.mrf.mxu1  ;;  %v2430_v49 = vpop.f32.mrf.mxu0 }
 0x29a   : > { %v6153_v49 = vld [vmem:[#allocation63_spill] sm:$0xff] }
 0x29b   : > { %v2243_v31 = vpop.f32.mrf.mxu1  ;;  %v5509_v63 = vpop.f32.mrf.mxu0  ;;  %2890 = vmatmul.mubr.bf16.gmra.mxu0 %v6150_v50  ;;  %v2283_v39 = vadd.f32 %v5312_v45, %v6153_v49 }
 0x29c   : > { %2897 = vmatprep.mubr.bf16.mxu0 %v5076_v37 }
 0x29d   : > { %v2435_v43 = vpop.f32.mrf.mxu0  ;;  %v2536_v61 = vpop.f32.mrf.mxu1  ;;  %2703 = vmatmul.mubr.bf16.gmra.mxu1 %v5178_v7 }
 0x29e   : > { %v5516_v21 = vadd.f32 %v2536_v61, %v2280_v53  ;;  %2710 = vmatprep.mubr.bf16.mxu1 %v6096_v15  ;;  %v6155_v61 = vld [vmem:[#allocation69_spill] sm:$0xff] }
 0x29f   : > { %v5519_v48 = vpop.f32.mrf.mxu0  ;;  %v2538_v31 = vpop.f32.mrf.mxu1 }
 0x2a0   : > { %6152 = vst [vmem:[#allocation40_spill] sm:$0xff] %v5519_v48 }
 0x2a1   : > { %v2438_v59 = vpop.f32.mrf.mxu0  ;;  %v2539_v24 = vpop.f32.mrf.mxu1 }
 0x2a2   : > { %v5523_v50 = vadd.f32 %v2539_v24, %v2283_v39  ;;  %v6156_v59 = vld [vmem:[#allocation67_spill] sm:$0xff] }
 0x2a3   : > { %v2441_v10 = vpop.f32.mrf.mxu0  ;;  %v2541_v37 = vpop.f32.mrf.mxu1  ;;  %2898 = vmatmul.mubr.bf16.gmra.mxu0 %v6154_v30  ;;  %v2294_v24 = vadd.f32 %v5324_v46, %v6156_v59 }
 0x2a4   : > { %2903 = vmatprep.mubr.bf16.mxu0 %v5089_v2  ;;  %v6157_v37 = vld [vmem:[#allocation71_spill] sm:$0xff] }
 0x2a5   : > { %v2442_v53 = vpop.f32.mrf.mxu0  ;;  %v2544_v43 = vpop.f32.mrf.mxu1  ;;  %2711 = vmatmul.mubr.bf16.gmra.mxu1 %v6155_v61 }
 0x2a6   : > { %2716 = vmatprep.mubr.bf16.mxu1 %v5345_v12  ;;  %v6159_v53 = vld [vmem:[#allocation68_spill] sm:$0xff] }
 0x2a7   : > { %v2443_v31 = vpop.f32.mrf.mxu0  ;;  %v2545_v55 = vpop.f32.mrf.mxu1  ;;  %v2297_v43 = vadd.f32 %v5335_v47, %v6159_v53 }
 0x2a9   : > { %v2444_v48 = vpop.f32.mrf.mxu0  ;;  %v2546_v45 = vpop.f32.mrf.mxu1 }
 0x2ab   : > { %v5529_v49 = vpop.f32.mrf.mxu0  ;;  %v2547_v39 = vpop.f32.mrf.mxu1  ;;  %2904 = vmatmul.mubr.bf16.gmra.mxu0 %v5091_v58 }
 0x2ac   : > { %2911 = vmatprep.mubr.bf16.mxu0 %v6137_v8  ;;  %v6160_v39 = vld [vmem:[#allocation54_spill] sm:$0xff] }
 0x2ad   : > { %v2449_v2 = vpop.f32.mrf.mxu0  ;;  %v2550_v10 = vpop.f32.mrf.mxu1  ;;  %2717 = vmatmul.mubr.bf16.gmra.mxu1 %v6157_v37 }
 0x2ae   : > { %v5536_v30 = vadd.f32 %v2550_v10, %v2294_v24  ;;  %2724 = vmatprep.mubr.bf16.mxu1 %v6103_v32  ;;  %v6161_v2 = vld [vmem:[#allocation75_spill] sm:$0xff] }
 0x2af   : > { %v5539_v55 = vpop.f32.mrf.mxu0  ;;  %v2552_v48 = vpop.f32.mrf.mxu1 }
 0x2b0   : > { %6158 = vst [vmem:[#allocation21_spill] sm:$0xff] %v5539_v55 }
 0x2b1   : > { %v2452_v58 = vpop.f32.mrf.mxu0  ;;  %v2553_v31 = vpop.f32.mrf.mxu1 }
 0x2b2   : > { %v5543_v45 = vadd.f32 %v2553_v31, %v2297_v43  ;;  %v6162_v58 = vld [vmem:[#allocation73_spill] sm:$0xff] }
 0x2b3   : > { %v2455_v46 = vpop.f32.mrf.mxu0  ;;  %v2555_v8 = vpop.f32.mrf.mxu1  ;;  %2912 = vmatmul.mubr.bf16.gmra.mxu0 %v6160_v39  ;;  %v2308_v31 = vadd.f32 %v5347_v42, %v6162_v58  ;;  %v6166_v58 = vld [vmem:[#allocation44_spill] sm:$0xff] }
 0x2b4   : > { %2917 = vmatprep.mubr.bf16.mxu0 %v5113_v5 }
 0x2b5   : > { %v2456_v59 = vpop.f32.mrf.mxu0  ;;  %v2558_v24 = vpop.f32.mrf.mxu1  ;;  %2725 = vmatmul.mubr.bf16.gmra.mxu1 %v6161_v2 }
 0x2b6   : > { %2730 = vmatprep.mubr.bf16.mxu1 %v5369_v60  ;;  %v6163_v59 = vld [vmem:[#allocation74_spill] sm:$0xff] }
 0x2b7   : > { %v2457_v10 = vpop.f32.mrf.mxu0  ;;  %v2559_v48 = vpop.f32.mrf.mxu1  ;;  %v2311_v24 = vadd.f32 %v5355_v20, %v6163_v59 }
 0x2b9   : > { %v2458_v55 = vpop.f32.mrf.mxu0  ;;  %v2560_v47 = vpop.f32.mrf.mxu1 }
 0x2ba   : > { %v6164_v47 = vld [vmem:[#allocation57_spill] sm:$0xff] }
 0x2bb   : > { %v5549_v53 = vpop.f32.mrf.mxu0  ;;  %v2561_v43 = vpop.f32.mrf.mxu1  ;;  %2918 = vmatmul.mubr.bf16.gmra.mxu0 %v5115_v14 }
 0x2bc   : > { %2925 = vmatprep.mubr.bf16.mxu0 %v6142_v1  ;;  %v6165_v43 = vld [vmem:[#allocation42_spill] sm:$0xff] }
 0x2bd   : > { %v2463_v5 = vpop.f32.mrf.mxu0  ;;  %v2564_v46 = vpop.f32.mrf.mxu1  ;;  %2731 = vmatmul.mubr.bf16.gmra.mxu1 %v5226_v13 }
 0x2be   : > { %v5556_v8 = vadd.f32 %v2564_v46, %v2308_v31  ;;  %2738 = vmatprep.mubr.bf16.mxu1 %v6111_v34  ;;  %v5568_v31 = vpack.c.bf16 %v6166_v58, %v6165_v43 }
 0x2bf   : > { %v5559_v55 = vpop.f32.mrf.mxu0  ;;  %v2566_v39 = vpop.f32.mrf.mxu1 }
 0x2c1   : > { %v2466_v14 = vpop.f32.mrf.mxu0  ;;  %v2567_v10 = vpop.f32.mrf.mxu1 }
 0x2c2   : > { %v5563_v48 = vadd.f32 %v2567_v10, %v2311_v24 }
 0x2c3   : > { %v2469_v42 = vpop.f32.mrf.mxu0  ;;  %v2569_v1 = vpop.f32.mrf.mxu1  ;;  %2926 = vmatmul.mubr.bf16.gmra.mxu0 %v6164_v47 }
 0x2c4   : > { %2931 = vmatprep.mubr.bf16.mxu0 %v6145_v0  ;;  %v6167_v42 = vld [vmem:[#allocation61_spill] sm:$0xff]  ;;  %v6168_v1 = vld [vmem:[#allocation78_spill] sm:$0xff] }
 0x2c5   : > { %v2470_v5 = vpop.f32.mrf.mxu0  ;;  %v2572_v46 = vpop.f32.mrf.mxu1  ;;  %2739 = vmatmul.mubr.bf16.gmra.mxu1 %v5238_v26  ;;  %v2322_v47 = vadd.f32 %v5375_v4, %v6168_v1 }
 0x2c6   : > { %2744 = vmatprep.mubr.bf16.mxu1 %v5568_v31  ;;  %v6169_v5 = vld [vmem:[#allocation43_spill] sm:$0xff] }
 0x2c7   : > { %v2471_v20 = vpop.f32.mrf.mxu0  ;;  %v2573_v39 = vpop.f32.mrf.mxu1 }
 0x2c8   : > { %v6170_v39 = vld [vmem:[#allocation79_spill] sm:$0xff] }
 0x2c9   : > { %v2472_v59 = vpop.f32.mrf.mxu0  ;;  %v2574_v24 = vpop.f32.mrf.mxu1 }
 0x2ca   : > { %v2325_v59 = vadd.f32 %v5386_v11, %v6170_v39 }
 0x2cb   : > { %v5573_v14 = vpop.f32.mrf.mxu0  ;;  %v2575_v10 = vpop.f32.mrf.mxu1  ;;  %2932 = vmatmul.mubr.bf16.gmra.mxu0 %v6167_v42 }
 0x2cc   : > { %2939 = vmatprep.mubr.bf16.mxu0 %v6149_v18 }
 0x2cd   : > { %v2477_v0 = vpop.f32.mrf.mxu0  ;;  %v2578_v43 = vpop.f32.mrf.mxu1  ;;  %2745 = vmatmul.mubr.bf16.gmra.mxu1 %v5255_v52 }
 0x2ce   : > { %v5580_v58 = vadd.f32 %v2578_v43, %v2322_v47  ;;  %2752 = vmatprep.mubr.bf16.mxu1 %v6169_v5 }
 0x2cf   : > { %v5583_v46 = vpop.f32.mrf.mxu0  ;;  %v2580_v20 = vpop.f32.mrf.mxu1 }
 0x2d1   : > { %v2480_v24 = vpop.f32.mrf.mxu0  ;;  %v2581_v10 = vpop.f32.mrf.mxu1 }
 0x2d2   : > { %v5587_v42 = vadd.f32 %v2581_v10, %v2325_v59  ;;  %v6172_v24 = vld [vmem:[#allocation66_spill] sm:$0xff]  ;;  %v6173_v10 = vld [vmem:[#allocation81_spill] sm:$0xff] }
 0x2d3   : > { %v2483_v4 = vpop.f32.mrf.mxu0  ;;  %v2583_v18 = vpop.f32.mrf.mxu1  ;;  %2940 = vmatmul.mubr.bf16.gmra.mxu0 %v5164_v54  ;;  %v2336_v54 = vadd.f32 %v5394_v35, %v6173_v10  ;;  %v6179_v10 = vld [vmem:[#allocation70_spill] sm:$0xff] }
 0x2d4   : > { %2945 = vmatprep.mubr.bf16.mxu0 %v5178_v7  ;;  %v6174_v18 = vld [vmem:[#allocation28_spill] sm:$0xff] }
 0x2d5   : > { %v2484_v1 = vpop.f32.mrf.mxu0  ;;  %v2586_v47 = vpop.f32.mrf.mxu1  ;;  %2753 = vmatmul.mubr.bf16.gmra.mxu1 %v5276_v3 }
 0x2d6   : > { %4043 = vmatprep.mubr.bf16.mxu1 %v4962_v28  ;;  %v6175_v28 = vld [vmem:[#allocation33_spill] sm:$0xff] }
 0x2d7   : > { %v2485_v0 = vpop.f32.mrf.mxu0  ;;  %v2587_v43 = vpop.f32.mrf.mxu1 }
 0x2d8   : > { %v6177_v43 = vld [vmem:[#allocation82_spill] sm:$0xff] }
 0x2d9   : > { %v2486_v20 = vpop.f32.mrf.mxu0  ;;  %v2588_v11 = vpop.f32.mrf.mxu1 }
 0x2da   : > { %v6178_v20 = vld [vmem:[#allocation38_spill] sm:$0xff] }
 0x2db   : > { %v5593_v39 = vpop.f32.mrf.mxu0  ;;  %v2589_v59 = vpop.f32.mrf.mxu1  ;;  %2946 = vmatmul.mubr.bf16.gmra.mxu0 %v6172_v24  ;;  %v2339_v11 = vadd.f32 %v6178_v20, %v6177_v43 }
 0x2dc   : > { %6171 = vst [vmem:[#allocation53_spill] sm:$0xff] %v5593_v39  ;;  %2953 = vmatprep.mubr.bf16.mxu0 %v6155_v61 }
 0x2dd   : > { %v2491_v7 = vpop.f32.mrf.mxu0  ;;  %v2592_v4 = vpop.f32.mrf.mxu1  ;;  %4044 = vmatmul.mubr.bf16.vlgmr.msra.gmra.mxu1 %v6174_v18  ;;  %v6181_v18 = vld [vmem:[#allocation45_spill] sm:$0xff] }
 0x2de   : > { %v5600_v1 = vadd.f32 %v2592_v4, %v2336_v54  ;;  %4047 = vmatprep.mubr.bf16.mxu1 %v6175_v28  ;;  %v6180_v4 = vld [vmem:[#allocation39_spill] sm:$0xff] }
 0x2df   : > { %v5603_v47 = vpop.f32.mrf.mxu0  ;;  %v2594_v0 = vpop.f32.mrf.mxu1 }
 0x2e0   : > { %6176 = vst [vmem:[#allocation26_spill] sm:$0xff] %v5603_v47 }
 0x2e1   : > { %v2494_v59 = vpop.f32.mrf.mxu0  ;;  %v2595_v24 = vpop.f32.mrf.mxu1 }
 0x2e2   : > { %v5607_v39 = vadd.f32 %v2595_v24, %v2339_v11  ;;  %v6182_v11 = vld [vmem:[#allocation72_spill] sm:$0xff]  ;;  %v6183_v24 = vld [vmem:[#allocation87_spill] sm:$0xff] }
 0x2e3   : > { %v2497_v35 = vpop.f32.mrf.mxu0  ;;  %v2597_v61 = vpop.f32.mrf.mxu1  ;;  %2954 = vmatmul.mubr.bf16.gmra.mxu0 %v6179_v10 }
 0x2e4   : > { %2959 = vmatprep.mubr.bf16.mxu0 %v6157_v37  ;;  %v2350_v35 = vadd.f32 %v5410_v22, %v6183_v24 }
 0x2e5   : > { %v2498_v54 = vpop.f32.mrf.mxu0  ;;  %v2600_v7 = vpop.f32.mrf.mxu1  ;;  %4048 = vmatmul.mubr.bf16.gmra.mxu1 %v6180_v4 }
 0x2e6   : > { %4051 = vmatprep.mubr.bf16.mxu1 %v6181_v18  ;;  %v6184_v54 = vld [vmem:[#allocation50_spill] sm:$0xff] }
 0x2e7   : > { %v2499_v28 = vpop.f32.mrf.mxu0  ;;  %v2601_v0 = vpop.f32.mrf.mxu1 }
 0x2e8   : > { %v6186_v28 = vld [vmem:[#allocation88_spill] sm:$0xff] }
 0x2e9   : > { %v2500_v47 = vpop.f32.mrf.mxu0  ;;  %v2602_v43 = vpop.f32.mrf.mxu1  ;;  %v2353_v0 = vadd.f32 %v5421_v29, %v6186_v28  ;;  %v6190_v28 = vld [vmem:[#allocation77_spill] sm:$0xff] }
 0x2ea   : > { %v6185_v47 = vld [vmem:[#allocation52_spill] sm:$0xff] }
 0x2eb   : > { %v2603_v20 = vpop.f32.mrf.mxu1  ;;  %v2793_v59 = vpop.f32.mrf.mxu0  ;;  %2960 = vmatmul.mubr.bf16.gmra.mxu0 %v6182_v11  ;;  %v6187_v11 = vld [vmem:[#allocation76_spill] sm:$0xff] }
 0x2ec   : > { %v5617_v61 = vadd.f32 %v2793_v59, %v5516_v21  ;;  %2967 = vmatprep.mubr.bf16.mxu0 %v6161_v2 }
 0x2ed   : > { %v2606_v37 = vpop.f32.mrf.mxu1  ;;  %v2795_v10 = vpop.f32.mrf.mxu0  ;;  %4052 = vmatmul.mubr.bf16.gmra.mxu1 %v6184_v54 }
 0x2ee   : > { %v5621_v7 = vadd.f32 %v2606_v37, %v2350_v35  ;;  %4055 = vmatprep.mubr.bf16.mxu1 %v6185_v47  ;;  %v6188_v37 = vld [vmem:[#allocation10_spill] sm:$0xff]  ;;  %v6189_v10 = vld [vmem:[#allocation55_spill] sm:$0xff] }
 0x2ef   : > { %v2608_v4 = vpop.f32.mrf.mxu1  ;;  %v2796_v18 = vpop.f32.mrf.mxu0 }
 0x2f0   : > { %v5627_v22 = vadd.f32 %v2796_v18, %v5523_v50 }
 0x2f1   : > { %v2609_v21 = vpop.f32.mrf.mxu1  ;;  %v2798_v43 = vpop.f32.mrf.mxu0 }
 0x2f2   : > { %v5629_v20 = vadd.f32 %v2609_v21, %v2353_v0  ;;  %v6191_v0 = vld [vmem:[#allocation89_spill] sm:$0xff] }
 0x2f3   : > { %v2611_v2 = vpop.f32.mrf.mxu1  ;;  %v2801_v59 = vpop.f32.mrf.mxu0  ;;  %2968 = vmatmul.mubr.bf16.gmra.mxu0 %v6187_v11  ;;  %v2364_v21 = vadd.f32 %v5429_v56, %v6191_v0  ;;  %v6196_v0 = vld [vmem:[#allocation16_spill] sm:$0xff] }
 0x2f4   : > { %2973 = vmatprep.mubr.bf16.mxu0 %v5226_v13  ;;  %v6192_v59 = vld [vmem:[#allocation13_spill] sm:$0xff] }
 0x2f5   : > { %v2614_v24 = vpop.f32.mrf.mxu1  ;;  %v2802_v35 = vpop.f32.mrf.mxu0  ;;  %4056 = vmatmul.mubr.bf16.gmra.mxu1 %v6188_v37 }
 0x2f6   : > { %4059 = vmatprep.mubr.bf16.mxu1 %v6189_v10  ;;  %v6193_v24 = vld [vmem:[#allocation58_spill] sm:$0xff]  ;;  %v6194_v10 = vld [vmem:[#allocation8_spill] sm:$0xff] }
 0x2f7   : > { %v2615_v29 = vpop.f32.mrf.mxu1  ;;  %v2803_v54 = vpop.f32.mrf.mxu0 }
 0x2f8   : > { %v2367_v29 = vadd.f32 %v5437_v36, %v6194_v10 }
 0x2f9   : > { %v2616_v50 = vpop.f32.mrf.mxu1  ;;  %v2804_v47 = vpop.f32.mrf.mxu0 }
 0x2fb   : > { %v2617_v4 = vpop.f32.mrf.mxu1  ;;  %v2807_v18 = vpop.f32.mrf.mxu0  ;;  %2974 = vmatmul.mubr.bf16.gmra.mxu0 %v6190_v28 }
 0x2fc   : > { %v5639_v43 = vadd.f32 %v2807_v18, %v5536_v30  ;;  %2981 = vmatprep.mubr.bf16.mxu0 %v5238_v26  ;;  %v6195_v4 = vld [vmem:[#allocation80_spill] sm:$0xff] }
 0x2fd   : > { %v2620_v13 = vpop.f32.mrf.mxu1  ;;  %v2809_v2 = vpop.f32.mrf.mxu0  ;;  %4060 = vmatmul.mubr.bf16.gmra.mxu1 %v6192_v59 }
 0x2fe   : > { %v5643_v11 = vadd.f32 %v2620_v13, %v2364_v21  ;;  %4063 = vmatprep.mubr.bf16.mxu1 %v6193_v24  ;;  %v6197_v21 = vld [vmem:[#allocation65_spill] sm:$0xff] }
 0x2ff   : > { %v2622_v35 = vpop.f32.mrf.mxu1  ;;  %v2810_v37 = vpop.f32.mrf.mxu0 }
 0x300   : > { %v5649_v56 = vadd.f32 %v2810_v37, %v5543_v45  ;;  %v6198_v35 = vld [vmem:[#allocation31_spill] sm:$0xff] }
 0x301   : > { %v2623_v30 = vpop.f32.mrf.mxu1  ;;  %v2812_v54 = vpop.f32.mrf.mxu0  ;;  %v6199_v37 = vld [vmem:[#allocation27_spill] sm:$0xff] }
 0x302   : > { %v5651_v50 = vadd.f32 %v2623_v30, %v2367_v29  ;;  %v2378_v10 = vadd.f32 %v5445_v57, %v6199_v37  ;;  %v6200_v54 = vld [vmem:[#allocation19_spill] sm:$0xff] }
 0x303   : > { %v2625_v26 = vpop.f32.mrf.mxu1  ;;  %v2815_v47 = vpop.f32.mrf.mxu0  ;;  %2982 = vmatmul.mubr.bf16.gmra.mxu0 %v6195_v4 }
 0x304   : > { %2987 = vmatprep.mubr.bf16.mxu0 %v5255_v52 }
 0x305   : > { %v2628_v18 = vpop.f32.mrf.mxu1  ;;  %v2816_v28 = vpop.f32.mrf.mxu0  ;;  %4064 = vmatmul.mubr.bf16.gmra.mxu1 %v6196_v0 }
 0x306   : > { %4067 = vmatprep.mubr.bf16.mxu1 %v6197_v21  ;;  %v6201_v18 = vld [vmem:[#allocation11_spill] sm:$0xff] }
 0x307   : > { %v2629_v36 = vpop.f32.mrf.mxu1  ;;  %v2817_v13 = vpop.f32.mrf.mxu0  ;;  %v2381_v28 = vadd.f32 %v5453_v16, %v6201_v18  ;;  %v6209_v18 = vld [vmem:[#allocation83_spill] sm:$0xff] }
 0x308   : > { %v6202_v13 = vld [vmem:[#allocation14_spill] sm:$0xff] }
 0x309   : > { %v2630_v45 = vpop.f32.mrf.mxu1  ;;  %v2818_v2 = vpop.f32.mrf.mxu0 }
 0x30a   : > { %v6203_v45 = vld [vmem:[#allocation86_spill] sm:$0xff]  ;;  %v6204_v2 = vld [vmem:[#allocation84_spill] sm:$0xff] }
 0x30b   : > { %v2631_v59 = vpop.f32.mrf.mxu1  ;;  %v2821_v24 = vpop.f32.mrf.mxu0  ;;  %2988 = vmatmul.mubr.bf16.gmra.mxu0 %v6198_v35 }
 0x30c   : > { %v5661_v29 = vadd.f32 %v2821_v24, %v5556_v8  ;;  %2995 = vmatprep.mubr.bf16.mxu0 %v5276_v3  ;;  %v6205_v59 = vpack.c.bf16 %v6203_v45, %v6204_v2  ;;  %v6212_v2 = vld [vmem:[#allocation17_spill] sm:$0xff] }
 0x30d   : > { %v2634_v52 = vpop.f32.mrf.mxu1  ;;  %v2823_v30 = vpop.f32.mrf.mxu0  ;;  %4068 = vmatmul.mubr.bf16.gmra.mxu1 %v6200_v54 }
 0x30e   : > { %v5665_v26 = vadd.f32 %v2634_v52, %v2378_v10  ;;  %4071 = vmatprep.mubr.bf16.mxu1 %v5200_v62  ;;  %v6206_v10 = vld [vmem:[#allocation3_spill] sm:$0xff]  ;;  %v6207_v52 = vld [vmem:[#allocation5_spill] sm:$0xff] }
 0x30f   : > { %v2636_v47 = vpop.f32.mrf.mxu1  ;;  %v2824_v4 = vpop.f32.mrf.mxu0  ;;  %v1410_v30 = vpack.c.bf16 %v6207_v52, %v6206_v10 }
 0x310   : > { %v5671_v57 = vadd.f32 %v2824_v4, %v5563_v48  ;;  %v6208_v4 = vld [vmem:[#allocation85_spill] sm:$0xff] }
 0x311   : > { %v2637_v8 = vpop.f32.mrf.mxu1  ;;  %v2826_v0 = vpop.f32.mrf.mxu0 }
 0x312   : > { %v5673_v21 = vadd.f32 %v2637_v8, %v2381_v28  ;;  %v6210_v28 = vpack.c.bf16 %v6208_v4, %v6209_v18  ;;  %v6211_v8 = vld [vmem:[#allocation32_spill] sm:$0xff] }
 0x313   : > { %v2639_v3 = vpop.f32.mrf.mxu1  ;;  %v2829_v36 = vpop.f32.mrf.mxu0  ;;  %2996 = vmatmul.mubr.bf16.gmra.mxu0 %v6202_v13  ;;  %v2392_v0 = vadd.f32 %v5461_v51, %v6211_v8  ;;  %v6216_v4 = vld [vmem:[#allocation36_spill] sm:$0xff] }
 0x314   : > { %3001 = vmatprep.mubr.bf16.mxu0 %v6205_v59  ;;  %v2395_v59 = vadd.f32 %v5469_v27, %v6212_v2  ;;  %v2406_v18 = vadd.f32 %v5477_v33, %v6216_v4 }
 0x315   : > { %v2642_v62 = vpop.f32.mrf.mxu1  ;;  %v2830_v24 = vpop.f32.mrf.mxu0  ;;  %4072 = vmatmul.mubr.bf16.gmra.mxu1 %v4878_v17 }
 0x316   : > { %4075 = vmatprep.mubr.bf16.mxu1 %v5224_v19 }
 0x317   : > { %v2643_v16 = vpop.f32.mrf.mxu1  ;;  %v2831_v48 = vpop.f32.mrf.mxu0 }
 0x319   : > { %v2644_v35 = vpop.f32.mrf.mxu1  ;;  %v2832_v37 = vpop.f32.mrf.mxu0 }
 0x31a   : > { %v6213_v35 = vld [vmem:[#allocation4_spill] sm:$0xff] }
 0x31b   : > { %v2645_v54 = vpop.f32.mrf.mxu1  ;;  %v2835_v47 = vpop.f32.mrf.mxu0  ;;  %3002 = vmatmul.mubr.bf16.gmra.mxu0 %v6210_v28 }
 0x31c   : > { %v5689_v17 = vadd.f32 %v2835_v47, %v5580_v58  ;;  %3009 = vmatprep.mubr.bf16.mxu0 %v1410_v30 }
 0x31d   : > { %v2648_v19 = vpop.f32.mrf.mxu1  ;;  %v2837_v3 = vpop.f32.mrf.mxu0  ;;  %4076 = vmatmul.mubr.bf16.gmra.mxu1 %v4902_v38  ;;  %v6214_v38 = vld [vmem:[#allocation2_spill] sm:$0xff] }
 0x31e   : > { %v5692_v36 = vadd.f32 %v2648_v19, %v2392_v0  ;;  %4079 = vmatprep.mubr.bf16.mxu1 %v5253_v40  ;;  %v6215_v37 = vpack.c.bf16 %v6213_v35, %v6214_v38  ;;  %v6217_v3 = vld [vmem:[#allocation20_spill] sm:$0xff] }
 0x31f   : > { %v2650_v13 = vpop.f32.mrf.mxu1  ;;  %v2838_v45 = vpop.f32.mrf.mxu0 }
 0x320   : > { %v5698_v62 = vadd.f32 %v2838_v45, %v5587_v42  ;;  %v2409_v13 = vadd.f32 %v5485_v44, %v6217_v3 }
 0x321   : > { %v2651_v51 = vpop.f32.mrf.mxu1  ;;  %v2840_v58 = vpop.f32.mrf.mxu0 }
 0x322   : > { %v5700_v24 = vadd.f32 %v2651_v51, %v2395_v59 }
 0x323   : > { %v2653_v16 = vpop.f32.mrf.mxu1  ;;  %v2843_v48 = vpop.f32.mrf.mxu0  ;;  %3010 = vmatmul.mubr.bf16.gmra.mxu0 %v6215_v37 }
 0x325   : > { %v2656_v10 = vpop.f32.mrf.mxu1  ;;  %v2844_v40 = vpop.f32.mrf.mxu0  ;;  %4080 = vmatmul.mubr.bf16.gmra.mxu1 %v4931_v23 }
 0x326   : > { %4083 = vmatprep.mubr.bf16.mxu1 %v5298_v9 }
 0x327   : > { %v2657_v27 = vpop.f32.mrf.mxu1  ;;  %v2845_v52 = vpop.f32.mrf.mxu0 }
 0x329   : > { %v2658_v42 = vpop.f32.mrf.mxu1  ;;  %v2846_v30 = vpop.f32.mrf.mxu0 }
 0x32a   : > { %v6219_v42 = vld [vmem:[#allocation22_spill] sm:$0xff] }
 0x32b   : > { %v2659_v54 = vpop.f32.mrf.mxu1  ;;  %v2849_v47 = vpop.f32.mrf.mxu0  ;;  %v6220_v30 = vld [vmem:[#allocation34_spill] sm:$0xff] }
 0x32c   : > { %v5710_v28 = vadd.f32 %v2849_v47, %v5600_v1  ;;  %v2423_v54 = vadd.f32 %v6220_v30, %v6219_v42  ;;  %v6227_v42 = vld [vmem:[#allocation46_spill] sm:$0xff] }
 0x32d   : > { %v2662_v8 = vpop.f32.mrf.mxu1  ;;  %v2851_v0 = vpop.f32.mrf.mxu0  ;;  %4084 = vmatmul.mubr.bf16.gmra.mxu1 %v4955_v25 }
 0x32e   : > { %v5713_v19 = vadd.f32 %v2662_v8, %v2406_v18  ;;  %4087 = vmatprep.mubr.bf16.mxu1 %v5322_v6 }
 0x32f   : > { %v2664_v23 = vpop.f32.mrf.mxu1  ;;  %v2852_v9 = vpop.f32.mrf.mxu0 }
 0x330   : > { %v5719_v45 = vadd.f32 %v2852_v9, %v5607_v39  ;;  %v6218_v39 = vld [vmem:[#allocation37_spill] sm:$0xff] }
 0x331   : > { %v2665_v33 = vpop.f32.mrf.mxu1  ;;  %v2854_v2 = vpop.f32.mrf.mxu0  ;;  %v2420_v37 = vadd.f32 %v5493_v41, %v6218_v39 }
 0x332   : > { %v5721_v1 = vadd.f32 %v2665_v33, %v2409_v13  ;;  %v6222_v2 = vld [vmem:[#allocation60_spill] sm:$0xff] }
 0x333   : > { %v2667_v59 = vpop.f32.mrf.mxu1  ;;  %v2857_v51 = vpop.f32.mrf.mxu0 }
 0x334   : > { %v6223_v51 = vld [vmem:[#allocation6_spill] sm:$0xff] }
 0x335   : > { %v2670_v58 = vpop.f32.mrf.mxu1  ;;  %v2858_v25 = vpop.f32.mrf.mxu0  ;;  %4088 = vmatmul.mubr.bf16.gmra.mxu1 %v6096_v15 }
 0x336   : > { %4091 = vmatprep.mubr.bf16.mxu1 %v5345_v12  ;;  %v2434_v58 = vadd.f32 %v5509_v63, %v6223_v51 }
 0x337   : > { %v2671_v6 = vpop.f32.mrf.mxu1  ;;  %v2859_v16 = vpop.f32.mrf.mxu0 }
 0x339   : > { %v2672_v48 = vpop.f32.mrf.mxu1  ;;  %v2860_v35 = vpop.f32.mrf.mxu0 }
 0x33a   : > { %v6224_v35 = vld [vmem:[#allocation23_spill] sm:$0xff] }
 0x33b   : > { %v2673_v44 = vpop.f32.mrf.mxu1  ;;  %v2863_v38 = vpop.f32.mrf.mxu0 }
 0x33c   : > { %v5728_v10 = vadd.f32 %v2863_v38, %v5621_v7  ;;  %v6225_v44 = vld [vmem:[#allocation40_spill] sm:$0xff] }
 0x33d   : > { %v2676_v40 = vpop.f32.mrf.mxu1  ;;  %v2865_v27 = vpop.f32.mrf.mxu0  ;;  %4092 = vmatmul.mubr.bf16.gmra.mxu1 %v6103_v32  ;;  %v2437_v38 = vadd.f32 %v6225_v44, %v6224_v35 }
 0x33e   : > { %v5731_v52 = vadd.f32 %v2676_v40, %v2420_v37  ;;  %4095 = vmatprep.mubr.bf16.mxu1 %v5369_v60 }
 0x33f   : > { %v2678_v15 = vpop.f32.mrf.mxu1  ;;  %v2866_v12 = vpop.f32.mrf.mxu0 }
 0x340   : > { %v5737_v47 = vadd.f32 %v2866_v12, %v5629_v20  ;;  %v6221_v20 = vld [vmem:[#allocation48_spill] sm:$0xff] }
 0x341   : > { %v2679_v41 = vpop.f32.mrf.mxu1  ;;  %v2868_v4 = vpop.f32.mrf.mxu0  ;;  %v1408_v59 = vpack.c.bf16 %v6222_v2, %v6221_v20  ;;  %v6230_v20 = vld [vmem:[#allocation24_spill] sm:$0xff]  ;;  %v6231_v2 = vld [vmem:[#allocation21_spill] sm:$0xff] }
 0x342   : > { %v5739_v7 = vadd.f32 %v2679_v41, %v2423_v54 }
 0x343   : > { %v2681_v18 = vpop.f32.mrf.mxu1  ;;  %v2871_v8 = vpop.f32.mrf.mxu0 }
 0x345   : > { %v2684_v0 = vpop.f32.mrf.mxu1  ;;  %v2872_v32 = vpop.f32.mrf.mxu0  ;;  %4096 = vmatmul.mubr.bf16.gmra.mxu1 %v6111_v34 }
 0x346   : > { %4099 = vmatprep.mubr.bf16.mxu1 %v5568_v31 }
 0x347   : > { %v2685_v60 = vpop.f32.mrf.mxu1  ;;  %v2873_v23 = vpop.f32.mrf.mxu0 }
 0x349   : > { %v2686_v9 = vpop.f32.mrf.mxu1  ;;  %v2874_v3 = vpop.f32.mrf.mxu0 }
 0x34b   : > { %v2687_v13 = vpop.f32.mrf.mxu1  ;;  %v2877_v33 = vpop.f32.mrf.mxu0 }
 0x34c   : > { %v5748_v25 = vadd.f32 %v2877_v33, %v5643_v11 }
 0x34d   : > { %v2690_v6 = vpop.f32.mrf.mxu1  ;;  %v2879_v16 = vpop.f32.mrf.mxu0  ;;  %4100 = vmatmul.mubr.bf16.gmra.mxu1 %v6169_v5  ;;  %v6226_v5 = vld [vmem:[#allocation49_spill] sm:$0xff] }
 0x34e   : > { %v5751_v34 = vadd.f32 %v2690_v6, %v2434_v58  ;;  %4103 = vmatprep.mubr.bf16.mxu1 %v1408_v59  ;;  %v6228_v30 = vpack.c.bf16 %v6226_v5, %v6227_v42  ;;  %v2451_v59 = vadd.f32 %v6231_v2, %v6230_v20 }
 0x34f   : > { %v2692_v31 = vpop.f32.mrf.mxu1  ;;  %v2880_v48 = vpop.f32.mrf.mxu0 }
 0x350   : > { %v5756_v39 = vadd.f32 %v2880_v48, %v5651_v50  ;;  %v6229_v50 = vld [vmem:[#allocation7_spill] sm:$0xff] }
 0x351   : > { %v2693_v37 = vpop.f32.mrf.mxu1  ;;  %v2882_v63 = vpop.f32.mrf.mxu0  ;;  %v2448_v32 = vadd.f32 %v5529_v49, %v6229_v50 }
 0x352   : > { %v5758_v40 = vadd.f32 %v2693_v37, %v2437_v38 }
 0x353   : > { %v2695_v11 = vpop.f32.mrf.mxu1  ;;  %v2885_v27 = vpop.f32.mrf.mxu0 }
 0x354   : > { %v6232_v27 = vld [vmem:[#allocation9_spill] sm:$0xff] }
 0x355   : > { %v2698_v15 = vpop.f32.mrf.mxu1  ;;  %v2886_v12 = vpop.f32.mrf.mxu0  ;;  %4104 = vmatmul.mubr.bf16.gmra.mxu1 %v6228_v30 }
 0x356   : > { %v2462_v15 = vadd.f32 %v5549_v53, %v6232_v27 }
 0x357   : > { %v2699_v54 = vpop.f32.mrf.mxu1  ;;  %v2887_v41 = vpop.f32.mrf.mxu0 }
 0x358   : > { %v6233_v41 = vld [vmem:[#allocation25_spill] sm:$0xff] }
 0x359   : > { %v2700_v4 = vpop.f32.mrf.mxu1  ;;  %v2888_v18 = vpop.f32.mrf.mxu0 }
 0x35a   : > { %v2465_v4 = vadd.f32 %v5559_v55, %v6233_v41 }
 0x35b   : > { %v2701_v8 = vpop.f32.mrf.mxu1  ;;  %v2891_v0 = vpop.f32.mrf.mxu0 }
 0x35c   : > { %v5766_v60 = vadd.f32 %v2891_v0, %v5665_v26 }
 0x35d   : > { %v2704_v23 = vpop.f32.mrf.mxu1  ;;  %v2893_v9 = vpop.f32.mrf.mxu0 }
 0x35e   : > { %v5768_v3 = vadd.f32 %v2704_v23, %v2448_v32 }
 0x35f   : > { %v2706_v13 = vpop.f32.mrf.mxu1  ;;  %v2894_v33 = vpop.f32.mrf.mxu0 }
 0x360   : > { %v5773_v51 = vadd.f32 %v2894_v33, %v5673_v21 }
 0x361   : > { %v2707_v58 = vpop.f32.mrf.mxu1  ;;  %v2896_v6 = vpop.f32.mrf.mxu0 }
 0x362   : > { %v5775_v16 = vadd.f32 %v2707_v58, %v2451_v59  ;;  %v6234_v58 = vld [vmem:[#allocation12_spill] sm:$0xff] }
 0x363   : > { %v2709_v49 = vpop.f32.mrf.mxu1  ;;  %v2899_v31 = vpop.f32.mrf.mxu0  ;;  %v2476_v55 = vadd.f32 %v5573_v14, %v6234_v58 }
 0x365   : > { %v2712_v26 = vpop.f32.mrf.mxu1  ;;  %v2900_v48 = vpop.f32.mrf.mxu0 }
 0x367   : > { %v2713_v35 = vpop.f32.mrf.mxu1  ;;  %v2901_v44 = vpop.f32.mrf.mxu0 }
 0x368   : > { %v6235_v35 = vld [vmem:[#allocation29_spill] sm:$0xff] }
 0x369   : > { %v2714_v38 = vpop.f32.mrf.mxu1  ;;  %v2902_v37 = vpop.f32.mrf.mxu0  ;;  %v2479_v44 = vadd.f32 %v5583_v46, %v6235_v35 }
 0x36b   : > { %v2715_v63 = vpop.f32.mrf.mxu1  ;;  %v2905_v11 = vpop.f32.mrf.mxu0 }
 0x36c   : > { %v5780_v21 = vadd.f32 %v2905_v11, %v5692_v36 }
 0x36d   : > { %v2718_v12 = vpop.f32.mrf.mxu1  ;;  %v2907_v5 = vpop.f32.mrf.mxu0 }
 0x36e   : > { %v5782_v42 = vadd.f32 %v2718_v12, %v2462_v15 }
 0x36f   : > { %v2720_v30 = vpop.f32.mrf.mxu1  ;;  %v2908_v54 = vpop.f32.mrf.mxu0 }
 0x370   : > { %v5787_v18 = vadd.f32 %v2908_v54, %v5700_v24 }
 0x371   : > { %v2721_v8 = vpop.f32.mrf.mxu1  ;;  %v2910_v0 = vpop.f32.mrf.mxu0 }
 0x372   : > { %v5789_v50 = vadd.f32 %v2721_v8, %v2465_v4  ;;  %v6236_v8 = vld [vmem:[#allocation15_spill] sm:$0xff]  ;;  %v6237_v0 = vld [vmem:[#allocation53_spill] sm:$0xff] }
 0x373   : > { %v2723_v53 = vpop.f32.mrf.mxu1  ;;  %v2913_v32 = vpop.f32.mrf.mxu0  ;;  %v2490_v46 = vadd.f32 %v6237_v0, %v6236_v8 }
 0x375   : > { %v2726_v36 = vpop.f32.mrf.mxu1  ;;  %v2914_v23 = vpop.f32.mrf.mxu0 }
 0x377   : > { %v2727_v9 = vpop.f32.mrf.mxu1  ;;  %v2915_v13 = vpop.f32.mrf.mxu0 }
 0x378   : > { %v6238_v13 = vld [vmem:[#allocation18_spill] sm:$0xff] }
 0x379   : > { %v2728_v33 = vpop.f32.mrf.mxu1  ;;  %v2916_v20 = vpop.f32.mrf.mxu0 }
 0x37a   : > { %v6239_v33 = vld [vmem:[#allocation26_spill] sm:$0xff] }
 0x37b   : > { %v2729_v2 = vpop.f32.mrf.mxu1  ;;  %v2919_v59 = vpop.f32.mrf.mxu0  ;;  %v2493_v20 = vadd.f32 %v6239_v33, %v6238_v13 }
 0x37c   : > { %v5794_v24 = vadd.f32 %v2919_v59, %v5713_v19 }
 0x37d   : > { %v2732_v6 = vpop.f32.mrf.mxu1  ;;  %v2921_v49 = vpop.f32.mrf.mxu0 }
 0x37e   : > { %v5796_v31 = vadd.f32 %v2732_v6, %v2476_v55 }
 0x37f   : > { %v2734_v26 = vpop.f32.mrf.mxu1  ;;  %v2922_v48 = vpop.f32.mrf.mxu0 }
 0x380   : > { %v5801_v38 = vadd.f32 %v2922_v48, %v5721_v1 }
 0x381   : > { %v2735_v37 = vpop.f32.mrf.mxu1  ;;  %v2924_v63 = vpop.f32.mrf.mxu0 }
 0x382   : > { %v5803_v11 = vadd.f32 %v2735_v37, %v2479_v44 }
 0x383   : > { %v2737_v14 = vpop.f32.mrf.mxu1  ;;  %v2927_v27 = vpop.f32.mrf.mxu0 }
 0x385   : > { %v2740_v19 = vpop.f32.mrf.mxu1  ;;  %v2928_v15 = vpop.f32.mrf.mxu0 }
 0x387   : > { %v2741_v12 = vpop.f32.mrf.mxu1  ;;  %v2929_v5 = vpop.f32.mrf.mxu0 }
 0x389   : > { %v2742_v30 = vpop.f32.mrf.mxu1  ;;  %v2930_v54 = vpop.f32.mrf.mxu0 }
 0x38b   : > { %v2743_v41 = vpop.f32.mrf.mxu1  ;;  %v2933_v4 = vpop.f32.mrf.mxu0 }
 0x38c   : > { %v5808_v1 = vadd.f32 %v2933_v4, %v5731_v52 }
 0x38d   : > { %v2746_v53 = vpop.f32.mrf.mxu1  ;;  %v2935_v32 = vpop.f32.mrf.mxu0 }
 0x38e   : > { %v5810_v36 = vadd.f32 %v2746_v53, %v2490_v46 }
 0x38f   : > { %v2748_v23 = vpop.f32.mrf.mxu1  ;;  %v2936_v9 = vpop.f32.mrf.mxu0 }
 0x390   : > { %v5815_v2 = vadd.f32 %v2936_v9, %v5739_v7 }
 0x391   : > { %v2749_v59 = vpop.f32.mrf.mxu1  ;;  %v2938_v58 = vpop.f32.mrf.mxu0 }
 0x392   : > { %v5817_v55 = vadd.f32 %v2749_v59, %v2493_v20 }
 0x393   : > { %v2751_v6 = vpop.f32.mrf.mxu1  ;;  %v2941_v49 = vpop.f32.mrf.mxu0 }
 0x395   : > { %v2754_v52 = vpop.f32.mrf.mxu1  ;;  %v2942_v26 = vpop.f32.mrf.mxu0 }
 0x397   : > { %v2755_v48 = vpop.f32.mrf.mxu1  ;;  %v2943_v35 = vpop.f32.mrf.mxu0 }
 0x399   : > { %v2756_v44 = vpop.f32.mrf.mxu1  ;;  %v2944_v37 = vpop.f32.mrf.mxu0 }
 0x39b   : > { %v2757_v63 = vpop.f32.mrf.mxu1  ;;  %v2947_v14 = vpop.f32.mrf.mxu0 }
 0x39c   : > { %v5820_v27 = vadd.f32 %v2947_v14, %v5751_v34 }
 0x39d   : > { %v2949_v7 = vpop.f32.mrf.mxu0  ;;  %v4045_v19 = vpop.f32.mrf.mxu1 }
 0x39f   : > { %v2950_v15 = vpop.f32.mrf.mxu0  ;;  %v3050_v12 = vpop.f32.mrf.mxu1 }
 0x3a0   : > { %v5823_v5 = vadd.f32 %v2950_v15, %v5758_v40  ;;  %v3051_v8 = vadd.f32 %v3050_v12, %v5617_v61 }
 0x3a1   : > { %v2952_v30 = vpop.f32.mrf.mxu0  ;;  %v4046_v54 = vpop.f32.mrf.mxu1 }
 0x3a3   : > { %v2955_v41 = vpop.f32.mrf.mxu0  ;;  %v3053_v4 = vpop.f32.mrf.mxu1 }
 0x3a4   : > { %v3054_v0 = vadd.f32 %v3053_v4, %v5627_v22 }
 0x3a5   : > { %v2956_v34 = vpop.f32.mrf.mxu0  ;;  %v4049_v46 = vpop.f32.mrf.mxu1 }
 0x3a6   : > { %v3784_v53 = vpack.c.bf16 %v3054_v0, %v3051_v8 }
 0x3a7   : > { %v2957_v40 = vpop.f32.mrf.mxu0  ;;  %v3064_v32 = vpop.f32.mrf.mxu1 }
 0x3a8   : > { %3785 = vst [vmem:[%s5831_s10] sm:$0xff] %v3784_v53   ;;  %v3065_v61 = vadd.f32 %v3064_v32, %v5639_v43 }
 0x3a9   : > { %v2958_v23 = vpop.f32.mrf.mxu0  ;;  %v4050_v9 = vpop.f32.mrf.mxu1 }
 0x3ab   : > { %v2961_v13 = vpop.f32.mrf.mxu0  ;;  %v3067_v33 = vpop.f32.mrf.mxu1 }
 0x3ac   : > { %v5836_v22 = vadd.f32 %v2961_v13, %v5768_v3  ;;  %v3068_v20 = vadd.f32 %v3067_v33, %v5649_v56 }
 0x3ad   : > { %v2963_v59 = vpop.f32.mrf.mxu0  ;;  %v4053_v58 = vpop.f32.mrf.mxu1 }
 0x3ae   : > { %v3789_v6 = vpack.c.bf16 %v3068_v20, %v3065_v61 }
 0x3af   : > { %v2964_v49 = vpop.f32.mrf.mxu0  ;;  %v3078_v52 = vpop.f32.mrf.mxu1 }
 0x3b0   : > { %3861 = vst [vmem:[%s5831_s10 + $0x8] sm:$0xff] %v3789_v6   ;;  %v5841_v26 = vadd.f32 %v2964_v49, %v5775_v16  ;;  %v3079_v43 = vadd.f32 %v3078_v52, %v5661_v29 }
 0x3b1   : > { %v2966_v48 = vpop.f32.mrf.mxu0  ;;  %v4054_v35 = vpop.f32.mrf.mxu1 }
 0x3b3   : > { %v2969_v44 = vpop.f32.mrf.mxu0  ;;  %v3081_v37 = vpop.f32.mrf.mxu1 }
 0x3b4   : > { %v3082_v3 = vadd.f32 %v3081_v37, %v5671_v57 }
 0x3b5   : > { %v2970_v63 = vpop.f32.mrf.mxu0  ;;  %v4057_v56 = vpop.f32.mrf.mxu1 }
 0x3b6   : > { %v3794_v14 = vpack.c.bf16 %v3082_v3, %v3079_v43 }
 0x3b7   : > { %v2971_v7 = vpop.f32.mrf.mxu0  ;;  %v3092_v19 = vpop.f32.mrf.mxu1 }
 0x3b8   : > { %3862 = vst [vmem:[%s5831_s10 + $0x10] sm:$0xff] %v3794_v14   ;;  %v3093_v54 = vadd.f32 %v3092_v19, %v5689_v17 }
 0x3b9   : > { %v2972_v15 = vpop.f32.mrf.mxu0  ;;  %v4058_v12 = vpop.f32.mrf.mxu1 }
 0x3bb   : > { %v2975_v30 = vpop.f32.mrf.mxu0  ;;  %v3095_v16 = vpop.f32.mrf.mxu1 }
 0x3bc   : > { %v5848_v41 = vadd.f32 %v2975_v30, %v5782_v42  ;;  %v3096_v29 = vadd.f32 %v3095_v16, %v5698_v62 }
 0x3bd   : > { %v2977_v4 = vpop.f32.mrf.mxu0  ;;  %v4061_v57 = vpop.f32.mrf.mxu1 }
 0x3be   : > { %v3799_v8 = vpack.c.bf16 %v3096_v29, %v3093_v54 }
 0x3bf   : > { %v2978_v0 = vpop.f32.mrf.mxu0  ;;  %v3106_v34 = vpop.f32.mrf.mxu1 }
 0x3c0   : > { %3863 = vst [vmem:[%s5831_s10 + $0x18] sm:$0xff] %v3799_v8   ;;  %v5853_v46 = vadd.f32 %v2978_v0, %v5789_v50  ;;  %v3107_v17 = vadd.f32 %v3106_v34, %v5710_v28 }
 0x3c1   : > { %v2980_v53 = vpop.f32.mrf.mxu0  ;;  %v4062_v40 = vpop.f32.mrf.mxu1 }
 0x3c3   : > { %v2983_v32 = vpop.f32.mrf.mxu0  ;;  %v3109_v23 = vpop.f32.mrf.mxu1 }
 0x3c4   : > { %v3110_v42 = vadd.f32 %v3109_v23, %v5719_v45 }
 0x3c5   : > { %v2984_v9 = vpop.f32.mrf.mxu0  ;;  %v4065_v62 = vpop.f32.mrf.mxu1 }
 0x3c6   : > { %v3804_v13 = vpack.c.bf16 %v3110_v42, %v3107_v17 }
 0x3c7   : > { %v2985_v33 = vpop.f32.mrf.mxu0  ;;  %v3120_v61 = vpop.f32.mrf.mxu1 }
 0x3c8   : > { %3864 = vst [vmem:[%s5831_s10 + $0x20] sm:$0xff] %v3804_v13   ;;  %v3121_v6 = vadd.f32 %v3120_v61, %v5728_v10 }
 0x3c9   : > { %v2986_v20 = vpop.f32.mrf.mxu0  ;;  %v4066_v59 = vpop.f32.mrf.mxu1 }
 0x3cb   : > { %v2989_v58 = vpop.f32.mrf.mxu0  ;;  %v3123_v50 = vpop.f32.mrf.mxu1 }
 0x3cc   : > { %v5860_v49 = vadd.f32 %v2989_v58, %v5796_v31  ;;  %v3124_v28 = vadd.f32 %v3123_v50, %v5737_v47 }
 0x3cd   : > { %v2991_v52 = vpop.f32.mrf.mxu0  ;;  %v4069_v45 = vpop.f32.mrf.mxu1 }
 0x3ce   : > { %v3809_v48 = vpack.c.bf16 %v3124_v28, %v3121_v6 }
 0x3cf   : > { %v2992_v35 = vpop.f32.mrf.mxu0  ;;  %v3134_v44 = vpop.f32.mrf.mxu1 }
 0x3d0   : > { %3865 = vst [vmem:[%s5831_s10 + $0x28] sm:$0xff] %v3809_v48   ;;  %v5865_v37 = vadd.f32 %v2992_v35, %v5803_v11  ;;  %v3135_v10 = vadd.f32 %v3134_v44, %v5748_v25 }
 0x3d1   : > { %v2994_v43 = vpop.f32.mrf.mxu0  ;;  %v4070_v3 = vpop.f32.mrf.mxu1 }
 0x3d3   : > { %v2997_v63 = vpop.f32.mrf.mxu0  ;;  %v3137_v56 = vpop.f32.mrf.mxu1 }
 0x3d4   : > { %v3138_v31 = vadd.f32 %v3137_v56, %v5756_v39 }
 0x3d5   : > { %v2998_v14 = vpop.f32.mrf.mxu0  ;;  %v4073_v47 = vpop.f32.mrf.mxu1 }
 0x3d6   : > { %v3814_v7 = vpack.c.bf16 %v3138_v31, %v3135_v10 }
 0x3d7   : > { %v2999_v19 = vpop.f32.mrf.mxu0  ;;  %v3148_v15 = vpop.f32.mrf.mxu1 }
 0x3d8   : > { %3866 = vst [vmem:[%s5831_s10 + $0x30] sm:$0xff] %v3814_v7   ;;  %v3149_v54 = vadd.f32 %v3148_v15, %v5766_v60 }
 0x3d9   : > { %v3000_v12 = vpop.f32.mrf.mxu0  ;;  %v4074_v30 = vpop.f32.mrf.mxu1 }
 0x3db   : > { %v5870_v16 = vpop.f32.mrf.mxu0  ;;  %v3151_v11 = vpop.f32.mrf.mxu1 }
 0x3dc   : > { %v3152_v29 = vadd.f32 %v3151_v11, %v5773_v51 }
 0x3dd   : > { %v3005_v4 = vpop.f32.mrf.mxu0  ;;  %v4077_v25 = vpop.f32.mrf.mxu1 }
 0x3de   : > { %v3819_v39 = vpack.c.bf16 %v3152_v29, %v3149_v54 }
 0x3df   : > { %v5874_v57 = vpop.f32.mrf.mxu0  ;;  %v3162_v8 = vpop.f32.mrf.mxu1 }
 0x3e0   : > { %3867 = vst [vmem:[%s5831_s10 + $0x38] sm:$0xff] %v3819_v39   ;;  %v3163_v32 = vadd.f32 %v3162_v8, %v5780_v21 }
 0x3e1   : > { %v3008_v0 = vpop.f32.mrf.mxu0  ;;  %v4078_v34 = vpop.f32.mrf.mxu1 }
 0x3e3   : > { %v3011_v53 = vpop.f32.mrf.mxu0  ;;  %v3165_v40 = vpop.f32.mrf.mxu1 }
 0x3e4   : > { %v3166_v23 = vadd.f32 %v3165_v40, %v5787_v18 }
 0x3e5   : > { %v3012_v60 = vpop.f32.mrf.mxu0  ;;  %v4081_v17 = vpop.f32.mrf.mxu1 }
 0x3e6   : > { %v3824_v51 = vpack.c.bf16 %v3166_v23, %v3163_v32 }
 0x3e7   : > { %v3013_v42 = vpop.f32.mrf.mxu0  ;;  %v3176_v9 = vpop.f32.mrf.mxu1 }
 0x3e8   : > { %3868 = vst [vmem:[%s5831_s10 + $0x40] sm:$0xff] %v3824_v51   ;;  %v3177_v61 = vadd.f32 %v3176_v9, %v5794_v24 }
 0x3e9   : > { %v3014_v62 = vpop.f32.mrf.mxu0  ;;  %v4082_v13 = vpop.f32.mrf.mxu1 }
 0x3eb   : > { %v3179_v33 = vpop.f32.mrf.mxu1 }
 0x3ec   : > { %v3180_v20 = vadd.f32 %v3179_v33, %v5801_v38 }
 0x3ed   : > { %v4085_v59 = vpop.f32.mrf.mxu1 }
 0x3ee   : > { %v3829_v58 = vpack.c.bf16 %v3180_v20, %v3177_v61 }
 0x3ef   : > { %v3190_v21 = vpop.f32.mrf.mxu1 }
 0x3f0   : > { %3869 = vst [vmem:[%s5831_s10 + $0x48] sm:$0xff] %v3829_v58   ;;  %v3191_v6 = vadd.f32 %v3190_v21, %v5808_v1 }
 0x3f1   : > { %v4086_v18 = vpop.f32.mrf.mxu1 }
 0x3f3   : > { %v3193_v50 = vpop.f32.mrf.mxu1 }
 0x3f4   : > { %v3194_v28 = vadd.f32 %v3193_v50, %v5815_v2 }
 0x3f5   : > { %v4089_v52 = vpop.f32.mrf.mxu1 }
 0x3f6   : > { %v3834_v45 = vpack.c.bf16 %v3194_v28, %v3191_v6 }
 0x3f7   : > { %v3204_v48 = vpop.f32.mrf.mxu1 }
 0x3f8   : > { %3870 = vst [vmem:[%s5831_s10 + $0x50] sm:$0xff] %v3834_v45   ;;  %v3205_v38 = vadd.f32 %v3204_v48, %v5820_v27 }
 0x3f9   : > { %v4090_v35 = vpop.f32.mrf.mxu1 }
 0x3fb   : > { %v3207_v24 = vpop.f32.mrf.mxu1 }
 0x3fc   : > { %v3208_v44 = vadd.f32 %v3207_v24, %v5823_v5 }
 0x3fd   : > { %v4093_v43 = vpop.f32.mrf.mxu1 }
 0x3fe   : > { %v3839_v3 = vpack.c.bf16 %v3208_v44, %v3205_v38 }
 0x3ff   : > { %v3218_v63 = vpop.f32.mrf.mxu1 }
 0x400   : > { %3871 = vst [vmem:[%s5831_s10 + $0x58] sm:$0xff] %v3839_v3   ;;  %v3219_v2 = vadd.f32 %v3218_v63, %v5836_v22 }
 0x401   : > { %v4094_v56 = vpop.f32.mrf.mxu1 }
 0x403   : > { %v3221_v1 = vpop.f32.mrf.mxu1 }
 0x404   : > { %v3222_v10 = vadd.f32 %v3221_v1, %v5841_v26 }
 0x405   : > { %v4097_v31 = vpop.f32.mrf.mxu1 }
 0x406   : > { %v3844_v14 = vpack.c.bf16 %v3222_v10, %v3219_v2 }
 0x407   : > { %v3232_v47 = vpop.f32.mrf.mxu1 }
 0x408   : > { %3872 = vst [vmem:[%s5831_s10 + $0x60] sm:$0xff] %v3844_v14   ;;  %v3233_v5 = vadd.f32 %v3232_v47, %v5848_v41  ;;  %v3004_v41 = vadd.f32 %v5870_v16, %v5810_v36 }
 0x409   : > { %v4098_v7 = vpop.f32.mrf.mxu1 }
 0x40b   : > { %v3235_v27 = vpop.f32.mrf.mxu1 }
 0x40c   : > { %v3236_v19 = vadd.f32 %v3235_v27, %v5853_v46  ;;  %v3007_v46 = vadd.f32 %v5874_v57, %v5817_v55 }
 0x40d   : > { %v4101_v15 = vpop.f32.mrf.mxu1 }
 0x40e   : > { %v3849_v12 = vpack.c.bf16 %v3236_v19, %v3233_v5 }
 0x40f   : > { %v3246_v30 = vpop.f32.mrf.mxu1 }
 0x410   : > { %3873 = vst [vmem:[%s5831_s10 + $0x68] sm:$0xff] %v3849_v12   ;;  %v3247_v26 = vadd.f32 %v3246_v30, %v5860_v49 }
 0x411   : > { %v4102_v11 = vpop.f32.mrf.mxu1 }
 0x413   : > { %v3249_v22 = vpop.f32.mrf.mxu1 }
 0x414   : > { %v3250_v54 = vadd.f32 %v3249_v22, %v5865_v37 }
 0x415   : > { %v4105_v29 = vpop.f32.mrf.mxu1 }
 0x416   : > { %v3854_v4 = vpack.c.bf16 %v3250_v54, %v3247_v26 }
 0x417   : > { %v3260_v25 = vpop.f32.mrf.mxu1 }
 0x418   : > { %3874 = vst [vmem:[%s5831_s10 + $0x70] sm:$0xff] %v3854_v4   ;;  %v3261_v0 = vadd.f32 %v3260_v25, %v3004_v41 }
 0x419   : > { %v4106_v39 = vpop.f32.mrf.mxu1 }
 0x41b   : > { %v3263_v8 = vpop.f32.mrf.mxu1 }
 0x41c   : > { %v3264_v34 = vadd.f32 %v3263_v8, %v3007_v46 }
 0x41e   : > { %v3859_v53 = vpack.c.bf16 %v3264_v34, %v3261_v0 }
 0x420   : > { %3875 = vst [vmem:[%s5831_s10 + $0x78] sm:$0xff] %v3859_v53  }
 0x421 PF: > { %s13_s14 = sadd.s32 1, %s4270_s14   ;;  %s6240_s12 = smov %s4266_s13 }
 0x422   : > { %p10_p5 = scmp.ge.s32.totalorder %s13_s14, 4   ;;  %s6241_s13 = smov %s6243_s15 }
 0x424   :  { %12 = sbr.rel (!%p10_p5) target bundleno = 2 (0x2), region = 63 }

</bundles_post_ra>
